<compile_context>
chip_gen: v7x
topology: tpu7x:2x2x1
jax: 0.10.0
libtpu: 0.0.40
codegen_flags: <defaults>
</compile_context>

<pallas_src>
import functools

import numpy as np
import jax
import jax.numpy as jnp
from jax.experimental import pallas as pl
from jax.experimental.pallas import tpu as pltpu

# ----------------------- model configuration (small) -----------------------
CIN = 4    # input channels
CH = 8     # hidden channels (both layers)
CM = 8     # spatio-temporal memory M channels

G = 7 * CH                 # 56 gate rows per layer: [g, i, f, gp, ip, fp, o]
K0 = CIN + CH + CM + 1     # 21 : layer-0 activation [x | h0 | m | 1]
K1 = CH + CH + CM + 1      # 25 : layer-1 activation [h0 | h1 | m_ds | 1]
KOM = CH + CM              # 16 : output-gate activation [c_new | m_new]
KMD = CM + 1               # 9  : m_downsample / reset_m activation [m | 1]
KMAX = max(K0, K1, KOM, KMD)   # 25

# packed-weight row offsets (all multiples of 8 -> sublane-aligned slices)
R_G0 = 0                   # (G, K0)    merged gate weights, layer 0
R_OM0 = R_G0 + G           # (2CH, KOM) [[0.5*Wco 0.5*Wmo],[Wlc Wlm]], layer 0
R_G1 = R_OM0 + 2 * CH      # (G, K1)    merged gate weights, layer 1
R_OM1 = R_G1 + G           # (2CH, KOM) layer 1
R_MD = R_OM1 + 2 * CH      # (CM, KMD)  m_downsample (+bias column)
R_RM = R_MD + CM           # (CM, KMD)  reset_m (+bias column)
W_ROWS = R_RM + CM         # 160

# packed-state row offsets (single fused resident output block)
S_H0 = 0
S_M = S_H0 + CH            # 8
S_C0 = S_M + CM            # 16
S_H1 = S_C0 + CH           # 24
S_C1 = S_H1 + CH           # 32
S_ROWS = S_C1 + CH         # 40


# ------------------------------- kernel ------------------------------------
def _encoder_kernel(x_ref, w_ref, st_ref, *, t_chunk):
    tb = pl.program_id(1)
    n_tb = pl.num_programs(1)
    f32 = jnp.float32
    cdt = w_ref.dtype                       # matmul operand dtype (f32 or bf16)
    lanes = st_ref.shape[1]

    # first time-block of each lane-tile: zero-init resident recurrent state
    @pl.when(tb == 0)
    def _():
        st_ref[...] = jnp.zeros_like(st_ref)

    # ----- hoisted loop invariants (ones row + packed weight slices) -------
    ones = jnp.ones((1, lanes), dtype=cdt)
    wg0 = w_ref[R_G0:R_G0 + G, 0:K0]
    wom0 = w_ref[R_OM0:R_OM0 + 2 * CH, 0:KOM]
    wg1 = w_ref[R_G1:R_G1 + G, 0:K1]
    wom1 = w_ref[R_OM1:R_OM1 + 2 * CH, 0:KOM]
    wmd = w_ref[R_MD:R_MD + CM, 0:KMD]
    wrm = w_ref[R_RM:R_RM + CM, 0:KMD]

    def mm(w, v):
        return jnp.dot(w, v, preferred_element_type=f32)

    def cat(*parts):
        return jnp.concatenate([p.astype(cdt) for p in parts], axis=0)

    def cell(gpre, c, m, w_om):
        # gpre rows: [g, i, f, gp, ip, fp, o] * CH.  Sigmoid gates (i, f, ip,
        # fp, o) already carry the 0.5 pre-scale folded into the packed
        # weights/bias, so sigmoid(z) == 0.5*tanh(z_scaled) + 0.5 with no
        # extra input multiply (tanh runs on the EUP slot).
        g = jnp.tanh(gpre[0 * CH:1 * CH])
        i = 0.5 * jnp.tanh(gpre[1 * CH:2 * CH]) + 0.5
        f = 0.5 * jnp.tanh(gpre[2 * CH:3 * CH]) + 0.5
        c_new = f * c + i * g
        gp = jnp.tanh(gpre[3 * CH:4 * CH])
        ip = 0.5 * jnp.tanh(gpre[4 * CH:5 * CH]) + 0.5
        fp = 0.5 * jnp.tanh(gpre[5 * CH:6 * CH]) + 0.5
        m_new = fp * m + ip * gp
        # one matmul for (Wco@c + Wmo@m) and (Wlc@c + Wlm@m); top half of
        # w_om is pre-scaled by 0.5 (o is a sigmoid gate).
        om = mm(w_om, cat(c_new, m_new))
        o = 0.5 * jnp.tanh(gpre[6 * CH:7 * CH] + om[0:CH]) + 0.5
        h_new = o * jnp.tanh(om[CH:2 * CH])
        return h_new, c_new, m_new

    # load resident state once per grid step (packed [h0, m, c0, h1, c1])
    st = st_ref[...]
    h0 = st[S_H0:S_H0 + CH]
    m = st[S_M:S_M + CM]
    c0 = st[S_C0:S_C0 + CH]
    h1 = st[S_H1:S_H1 + CH]
    c1 = st[S_C1:S_C1 + CH]

    # fully unrolled multi-timestep block (static x indices, cross-step ILP)
    for lt in range(t_chunk):
        x_t = x_ref[lt]                                   # (CIN, lanes)

        # layer 0: conv + gate projection + biases folded into one matmul
        g0 = mm(wg0, cat(x_t, h0, m, ones))
        h0, c0, m = cell(g0, c0, m, wom0)

        # layer 1: m_downsample (bias folded), then fused gate matmul
        m_ds = mm(wmd, cat(m, ones))
        g1 = mm(wg1, cat(h0, h1, m_ds, ones))
        h1, c1, m = cell(g1, c1, m_ds, wom1)

        # reset_m (DeConv2D, modeled as 1x1) on all but the final global step
        m_reset = mm(wrm, cat(m, ones))
        if lt == t_chunk - 1:
            m = jnp.where(tb == n_tb - 1, m, m_reset)
        else:
            m = m_reset

    st_ref[...] = jnp.concatenate([h0, m, c0, h1, c1], axis=0)


# --------------------- trace-time weight folding / packing ------------------
def _pack_params(p, dtype):
    """Fold conv + gate projection + biases + sigmoid pre-scale into one
    packed (W_ROWS, KMAX) weight array (gate rows permuted to xg order)."""
    f32 = jnp.float32

    def fold_layer(wconv, bconv, wx, bx, wh, wm):
        wxc = (wx @ wconv).astype(f32)              # (7CH, Kx) folded conv
        bxg = (wx @ bconv + bx).astype(f32)         # (7CH, 1)  folded bias
        z_h = jnp.zeros((CH, CH), f32)
        z_m = jnp.zeros((CH, CM), f32)
        wh = wh.astype(f32)
        wm = wm.astype(f32)
        # gate order: g, i, f, gp, ip, fp, o
        h_blk = [wh[0:CH], wh[CH:2 * CH], wh[2 * CH:3 * CH],
                 z_h, z_h, z_h, wh[3 * CH:4 * CH]]
        m_blk = [z_m, z_m, z_m,
                 wm[0:CH], wm[CH:2 * CH], wm[2 * CH:3 * CH], z_m]
        scale = [1.0, 0.5, 0.5, 1.0, 0.5, 0.5, 0.5]   # 0.5 on sigmoid gates
        rows = []
        for gi in range(7):
            blk = jnp.concatenate(
                [wxc[gi * CH:(gi + 1) * CH], h_blk[gi], m_blk[gi],
                 bxg[gi * CH:(gi + 1) * CH]], axis=1)
            rows.append(scale[gi] * blk)
        return jnp.concatenate(rows, axis=0)          # (7CH, Kx+CH+CM+1)

    wg0 = fold_layer(p["wconv0"], p["bconv0"], p["wx0"], p["bx0"],
                     p["wh0"], p["wm0"])
    wg1 = fold_layer(p["wconv1"], p["bconv1"], p["wx1"], p["bx1"],
                     p["wh1"], p["wm1"])

    def om(wco, wmo, wlc, wlm):
        top = 0.5 * jnp.concatenate([wco, wmo], axis=1)   # o is a sigmoid gate
        bot = jnp.concatenate([wlc, wlm], axis=1)
        return jnp.concatenate([top, bot], axis=0).astype(f32)

    wom0 = om(p["wco0"], p["wmo0"], p["wlc0"], p["wlm0"])
    wom1 = om(p["wco1"], p["wmo1"], p["wlc1"], p["wlm1"])
    wmd = jnp.concatenate([p["wmd0"], p["bmd0"]], axis=1).astype(f32)
    wrm = jnp.concatenate([p["wrm0"], p["brm0"]], axis=1).astype(f32)

    def padc(w):
        return jnp.pad(w, ((0, 0), (0, KMAX - w.shape[1])))

    w_packed = jnp.concatenate(
        [padc(wg0), padc(wom0), padc(wg1), padc(wom1), padc(wmd), padc(wrm)],
        axis=0)
    assert w_packed.shape == (W_ROWS, KMAX)
    return w_packed.astype(dtype)


# ------------------------------- wrapper ------------------------------------
def _tpu_generation_caps():
    """(lane_tile_cap, vmem_limit_cap_bytes, two_tensorcores_per_chip)."""
    kind = ""
    try:
        kind = jax.devices()[0].device_kind.lower()
    except Exception:
        pass
    if "v7" in kind:
        # 64 MiB physical VMEM, 2 TensorCores per chip
        return 16384, 48 * 1024 * 1024, True
    # v5e / v6e: 128 MiB physical VMEM, 1 TensorCore
    return 32768, 96 * 1024 * 1024, False


def encoder_st_trajlstm_forward(x_btchw, params, *, lane_tile=None,
                                t_chunk=None, matmul_dtype=jnp.float32):
    """x_btchw: [B, T, CIN, H, W]. Returns ((h0,c0),(h1,c1)), M (all NCHW)."""
    B, T, C, H, W = x_btchw.shape
    assert C == CIN
    N = B * H * W
    assert N % 128 == 0, "B*H*W must be a multiple of 128 (lane dim)"

    cap, vmem_cap, two_tc = _tpu_generation_caps()
    if lane_tile is None:
        lane_tile = N
        while lane_tile > cap and lane_tile % 2 == 0:
            lane_tile //= 2
        # on a 2-TC chip make sure the 'parallel' n axis has >= 2 tiles
        if two_tc and lane_tile == N and N >= 256 and (N // 2) % 128 == 0:
            lane_tile = N // 2
    assert N % lane_tile == 0 and lane_tile % 128 == 0
    nb = N // lane_tile

    if t_chunk is None:
        t_chunk = 1
        for d in range(1, min(T, 4) + 1):
            if T % d == 0:
                t_chunk = d
    assert T % t_chunk == 0
    n_tb = T // t_chunk

    # [B,T,C,H,W] -> [T, C, B*H*W]; HBM copy of x in the matmul dtype
    x = jnp.transpose(x_btchw, (1, 2, 0, 3, 4)).reshape(T, C, N)
    x = x.astype(matmul_dtype)
    w_packed = _pack_params(params, matmul_dtype)

    # explicit VMEM budget (double-buffered x + state blocks + temps headroom)
    xbytes = jnp.dtype(matmul_dtype).itemsize
    est = lane_tile * (2 * t_chunk * CIN * xbytes + 2 * S_ROWS * 4 + 256 * 4)
    est += 4 * W_ROWS * 128 * 4
    vmem_limit = int(min(vmem_cap, max(32 * 1024 * 1024, 2 * est)))

    # advisory cost estimate
    mm_flops_per_lane = 2 * (G * K0 + 2 * CH * KOM + CM * KMD      # layer 0 + m_down
                             + G * K1 + 2 * CH * KOM + CM * KMD)   # layer 1 + reset_m
    cost = pl.CostEstimate(
        flops=int(T * N * mm_flops_per_lane),
        transcendentals=int(T * N * 16 * CH),
        bytes_accessed=int(x.size * x.dtype.itemsize + S_ROWS * N * 4
                           + w_packed.size * w_packed.dtype.itemsize),
    )

    kern = functools.partial(_encoder_kernel, t_chunk=t_chunk)
    st = pl.pallas_call(
        kern,
        out_shape=jax.ShapeDtypeStruct((S_ROWS, N), jnp.float32),
        grid_spec=pltpu.PrefetchScalarGridSpec(
            num_scalar_prefetch=0,
            grid=(nb, n_tb),                       # n tiles outer, time inner
            in_specs=[
                pl.BlockSpec((t_chunk, CIN, lane_tile), lambda n, t: (t, 0, n)),
                pl.BlockSpec((W_ROWS, KMAX), lambda n, t: (0, 0)),
            ],
            out_specs=pl.BlockSpec((S_ROWS, lane_tile), lambda n, t: (0, n)),
        ),
        compiler_params=pltpu.CompilerParams(
            dimension_semantics=("parallel", "arbitrary"),
            vmem_limit_bytes=vmem_limit),
        cost_estimate=cost,
    )(x, w_packed)

    def to_nchw(rows, c):
        return jnp.transpose(rows.reshape(c, B, H, W), (1, 0, 2, 3))

    h0 = to_nchw(st[S_H0:S_H0 + CH], CH)
    c0 = to_nchw(st[S_C0:S_C0 + CH], CH)
    h1 = to_nchw(st[S_H1:S_H1 + CH], CH)
    c1 = to_nchw(st[S_C1:S_C1 + CH], CH)
    M = to_nchw(st[S_M:S_M + CM], CM)
    return ((h0, c0), (h1, c1)), M


# ------------------------- float64 NumPy reference --------------------------
def _reference_forward(x_btchw, p):
    """Ground-truth forward pass in float64 NumPy (no TPU matmul rounding)."""
    x = np.asarray(x_btchw, dtype=np.float64)
    B, T, C, H, W = x.shape
    N = B * H * W
    x = x.transpose(1, 2, 0, 3, 4).reshape(T, C, N)
    q = {k: np.asarray(v, dtype=np.float64) for k, v in p.items()}

    def sig(z):
        return 1.0 / (1.0 + np.exp(-z))

    def st_lstm(xg, h, c, m, wh, wm, wco, wmo, wlc, wlm):
        hg = wh @ h
        mg = wm @ m
        g = np.tanh(xg[0 * CH:1 * CH] + hg[0 * CH:1 * CH])
        i = sig(xg[1 * CH:2 * CH] + hg[1 * CH:2 * CH])
        f = sig(xg[2 * CH:3 * CH] + hg[2 * CH:3 * CH])
        c_new = f * c + i * g
        gp = np.tanh(xg[3 * CH:4 * CH] + mg[0 * CH:1 * CH])
        ip = sig(xg[4 * CH:5 * CH] + mg[1 * CH:2 * CH])
        fp = sig(xg[5 * CH:6 * CH] + mg[2 * CH:3 * CH])
        m_new = fp * m + ip * gp
        o = sig(xg[6 * CH:7 * CH] + hg[3 * CH:4 * CH]
                + wco @ c_new + wmo @ m_new)
        h_new = o * np.tanh(wlc @ c_new + wlm @ m_new)
        return h_new, c_new, m_new

    h0 = np.zeros((CH, N)); c0 = np.zeros((CH, N))
    h1 = np.zeros((CH, N)); c1 = np.zeros((CH, N))
    m = np.zeros((CM, N))
    for t in range(T):
        x0 = q["wconv0"] @ x[t] + q["bconv0"]
        xg0 = q["wx0"] @ x0 + q["bx0"]
        h0, c0, m = st_lstm(xg0, h0, c0, m, q["wh0"], q["wm0"], q["wco0"],
                            q["wmo0"], q["wlc0"], q["wlm0"])
        x1 = q["wconv1"] @ h0 + q["bconv1"]
        m = q["wmd0"] @ m + q["bmd0"]
        xg1 = q["wx1"] @ x1 + q["bx1"]
        h1, c1, m = st_lstm(xg1, h1, c1, m, q["wh1"], q["wm1"], q["wco1"],
                            q["wmo1"], q["wlc1"], q["wlm1"])
        if t != T - 1:
            m = q["wrm0"] @ m + q["brm0"]
    return h0, c0, h1, c1, m


# ------------------------------ parameters ----------------------------------
def make_params(key):
    shapes = {
        "wconv0": (CH, CIN), "bconv0": (CH, 1),
        "wx0": (7 * CH, CH), "bx0": (7 * CH, 1),
        "wh0": (4 * CH, CH), "wm0": (3 * CH, CM),
        "wco0": (CH, CH), "wmo0": (CH, CM),
        "wlc0": (CH, CH), "wlm0": (CH, CM),
        "wconv1": (CH, CH), "bconv1": (CH, 1),
        "wmd0": (CM, CM), "bmd0": (CM, 1),
        "wx1": (7 * CH, CH), "bx1": (7 * CH, 1),
        "wh1": (4 * CH, CH), "wm1": (3 * CH, CM),
        "wco1": (CH, CH), "wmo1": (CH, CM),
        "wlc1": (CH, CH), "wlm1": (CH, CM),
        "wrm0": (CM, CM), "brm0": (CM, 1),
    }
    params = {}
    keys = jax.random.split(key, len(shapes))
    # biases at 0.1 (not 0.01) so that bias-folding mistakes are detectable
    for k_rand, (name, shp) in zip(keys, sorted(shapes.items())):
        params[name] = 0.1 * jax.random.normal(k_rand, shp, dtype=jnp.float32)
    return params


# --------------------------------- main --------------------------------------
if __name__ == "__main__":
    key = jax.random.PRNGKey(0)
    k_x, k_p = jax.random.split(key)

    B, T, H, W = 2, 8, 16, 16
    x = jax.random.normal(k_x, (B, T, CIN, H, W), dtype=jnp.float32)
    params = make_params(k_p)

    # ground truth (float64 NumPy), reshaped to NCHW
    rh0, rc0, rh1, rc1, rm = _reference_forward(x, params)

    def back(a, c):
        return a.reshape(c, B, H, W).transpose(1, 0, 2, 3)

    refs = (back(rh0, CH), back(rc0, CH), back(rh1, CH), back(rc1, CH),
            back(rm, CM))

    ok = True

    # ---- f32 run: lane_tile=256 -> grid (2, 2): exercises the parallel n
    # axis, resident-state carry across time blocks, and 4-step unrolling.
    # Tolerance 5e-3 (vs 2e-2 before): bounded by MXU f32 pass precision,
    # structural/packing/gate-permutation bugs produce >= 1e-2 errors.
    states, M = encoder_st_trajlstm_forward(
        x, params, lane_tile=256, t_chunk=4, matmul_dtype=jnp.float32)
    (h0, c0), (h1, c1) = states
    jax.block_until_ready((h0, c0, h1, c1, M))
    for got, ref in zip((h0, c0, h1, c1, M), refs):
        g = np.asarray(got)
        ok = ok and bool(np.all(np.isfinite(g)))
        ok = ok and bool(np.allclose(g, ref, atol=5e-3, rtol=5e-3))
    assert ok, "f32 Pallas kernel output mismatch vs reference"

    # ---- bf16 weights + bf16 HBM x (v6e/v7x MXU-friendly, halves the
    # per-timestep HBM stream on v5e); f32 accumulation and state math.
    states_b, M_b = encoder_st_trajlstm_forward(
        x, params, lane_tile=256, t_chunk=4, matmul_dtype=jnp.bfloat16)
    (h0b, c0b), (h1b, c1b) = states_b
    jax.block_until_ready((h0b, c0b, h1b, c1b, M_b))
    for got, ref in zip((h0b, c0b, h1b, c1b, M_b), refs):
        g = np.asarray(got)
        ok = ok and bool(np.all(np.isfinite(g)))
        ok = ok and bool(np.allclose(g, ref, atol=2.5e-2, rtol=2.5e-2))
    assert ok, "bf16 Pallas kernel output mismatch vs reference"

    print("KERNEL_OK")
</pallas_src>

<mosaic_0001>
module attributes {stable_mosaic.version = 11 : i64} {
  func.func @_encoder_kernel(%arg0: i32, %arg1: i32, %arg2: memref<4x4x256xf32, #tpu.memory_space<vmem>>, %arg3: memref<160x25xf32, #tpu.memory_space<vmem>>, %arg4: memref<40x256xf32, #tpu.memory_space<vmem>>) attributes {dimension_semantics = [#tpu.dimension_semantics<parallel>, #tpu.dimension_semantics<arbitrary>], iteration_bounds = array<i64: 2, 2>, scalar_prefetch = 0 : i64, scratch_operands = 0 : i64, tpu.core_type = #tpu.core_type<tc>, window_params = [{transform_indices = @transform_0, window_bounds = array<i64: 4, 4, 256>}, {pipeline_mode = #tpu.pipeline_mode<synchronous>, transform_indices = @transform_1, window_bounds = array<i64: 160, 25>}, {transform_indices = @transform_2, window_bounds = array<i64: 40, 256>}]} {
    %c0_i32 = arith.constant 0 : i32
    %0 = arith.cmpi eq, %arg1, %c0_i32 : i32
    %1 = arith.extui %0 : i1 to i32
    %c0_i32_0 = arith.constant 0 : i32
    %2 = arith.cmpi ne, %1, %c0_i32_0 : i32
    scf.if %2 {
      %cst_124 = arith.constant 0.000000e+00 : f32
      %436 = vector.broadcast %cst_124 : f32 to vector<40x256xf32>
      %c0_125 = arith.constant 0 : index
      %c0_126 = arith.constant 0 : index
      %437 = vector.load %arg4[%c0_125, %c0_126] : memref<40x256xf32, #tpu.memory_space<vmem>>, vector<40x256xf32>
      tpu.vector_store %arg4[%c0_125, %c0_126], %436 {strides = array<i32>} : memref<40x256xf32, #tpu.memory_space<vmem>>, vector<40x256xf32>,
    } else {
    }
    %cst = arith.constant 1.000000e+00 : f32
    %3 = vector.broadcast %cst : f32 to vector<1x256xf32>
    %c0 = arith.constant 0 : index
    %c0_1 = arith.constant 0 : index
    %4 = vector.load %arg3[%c0, %c0_1] : memref<160x25xf32, #tpu.memory_space<vmem>>, vector<56x21xf32>
    %c56 = arith.constant 56 : index
    %c0_2 = arith.constant 0 : index
    %5 = vector.load %arg3[%c56, %c0_2] : memref<160x25xf32, #tpu.memory_space<vmem>>, vector<16x16xf32>
    %c72 = arith.constant 72 : index
    %c0_3 = arith.constant 0 : index
    %6 = vector.load %arg3[%c72, %c0_3] : memref<160x25xf32, #tpu.memory_space<vmem>>, vector<56x25xf32>
    %c128 = arith.constant 128 : index
    %c0_4 = arith.constant 0 : index
    %7 = vector.load %arg3[%c128, %c0_4] : memref<160x25xf32, #tpu.memory_space<vmem>>, vector<16x16xf32>
    %c144 = arith.constant 144 : index
    %c0_5 = arith.constant 0 : index
    %8 = vector.load %arg3[%c144, %c0_5] : memref<160x25xf32, #tpu.memory_space<vmem>>, vector<8x9xf32>
    %c152 = arith.constant 152 : index
    %c0_6 = arith.constant 0 : index
    %9 = vector.load %arg3[%c152, %c0_6] : memref<160x25xf32, #tpu.memory_space<vmem>>, vector<8x9xf32>
    %c0_7 = arith.constant 0 : index
    %c0_8 = arith.constant 0 : index
    %10 = vector.load %arg4[%c0_7, %c0_8] : memref<40x256xf32, #tpu.memory_space<vmem>>, vector<40x256xf32>
    %11 = vector.extract_strided_slice %10 {offsets = [0, 0], sizes = [8, 256], strides = [1, 1]} : vector<40x256xf32> to vector<8x256xf32>
    %12 = vector.extract_strided_slice %10 {offsets = [8, 0], sizes = [8, 256], strides = [1, 1]} : vector<40x256xf32> to vector<8x256xf32>
    %13 = vector.extract_strided_slice %10 {offsets = [16, 0], sizes = [8, 256], strides = [1, 1]} : vector<40x256xf32> to vector<8x256xf32>
    %14 = vector.extract_strided_slice %10 {offsets = [24, 0], sizes = [8, 256], strides = [1, 1]} : vector<40x256xf32> to vector<8x256xf32>
    %15 = vector.extract_strided_slice %10 {offsets = [32, 0], sizes = [8, 256], strides = [1, 1]} : vector<40x256xf32> to vector<8x256xf32>
    %c0_9 = arith.constant 0 : index
    %c0_10 = arith.constant 0 : index
    %c0_11 = arith.constant 0 : index
    %16 = vector.load %arg2[%c0_9, %c0_10, %c0_11] : memref<4x4x256xf32, #tpu.memory_space<vmem>>, vector<1x4x256xf32>
    %17 = vector.shape_cast %16 : vector<1x4x256xf32> to vector<4x256xf32>
    %18 = tpu.concatenate %17, %11, %12, %3 in 0 : vector<4x256xf32>, vector<8x256xf32>, vector<8x256xf32>, vector<1x256xf32> -> vector<21x256xf32>
    %cst_12 = arith.constant dense<0.000000e+00> : vector<56x256xf32>
    %19 = tpu.matmul %4, %18, %cst_12 {dimension_numbers = #tpu.dot_dimension_numbers<[1], [0], [0], [1], [0, 0, 1, 1], [], []>} : vector<56x21xf32>, vector<21x256xf32>, vector<56x256xf32> -> vector<56x256xf32>
    %20 = vector.extract_strided_slice %19 {offsets = [0, 0], sizes = [8, 256], strides = [1, 1]} : vector<56x256xf32> to vector<8x256xf32>
    %21 = math.tanh %20 : vector<8x256xf32>
    %22 = vector.extract_strided_slice %19 {offsets = [8, 0], sizes = [8, 256], strides = [1, 1]} : vector<56x256xf32> to vector<8x256xf32>
    %23 = math.tanh %22 : vector<8x256xf32>
    %cst_13 = arith.constant 5.000000e-01 : f32
    %24 = vector.broadcast %cst_13 : f32 to vector<8x256xf32>
    %25 = arith.mulf %24, %23 : vector<8x256xf32>
    %cst_14 = arith.constant 5.000000e-01 : f32
    %26 = vector.broadcast %cst_14 : f32 to vector<8x256xf32>
    %27 = arith.addf %25, %26 : vector<8x256xf32>
    %28 = vector.extract_strided_slice %19 {offsets = [16, 0], sizes = [8, 256], strides = [1, 1]} : vector<56x256xf32> to vector<8x256xf32>
    %29 = math.tanh %28 : vector<8x256xf32>
    %cst_15 = arith.constant 5.000000e-01 : f32
    %30 = vector.broadcast %cst_15 : f32 to vector<8x256xf32>
    %31 = arith.mulf %30, %29 : vector<8x256xf32>
    %cst_16 = arith.constant 5.000000e-01 : f32
    %32 = vector.broadcast %cst_16 : f32 to vector<8x256xf32>
    %33 = arith.addf %31, %32 : vector<8x256xf32>
    %34 = arith.mulf %33, %13 : vector<8x256xf32>
    %35 = arith.mulf %27, %21 : vector<8x256xf32>
    %36 = arith.addf %34, %35 : vector<8x256xf32>
    %37 = vector.extract_strided_slice %19 {offsets = [24, 0], sizes = [8, 256], strides = [1, 1]} : vector<56x256xf32> to vector<8x256xf32>
    %38 = math.tanh %37 : vector<8x256xf32>
    %39 = vector.extract_strided_slice %19 {offsets = [32, 0], sizes = [8, 256], strides = [1, 1]} : vector<56x256xf32> to vector<8x256xf32>
    %40 = math.tanh %39 : vector<8x256xf32>
    %cst_17 = arith.constant 5.000000e-01 : f32
    %41 = vector.broadcast %cst_17 : f32 to vector<8x256xf32>
    %42 = arith.mulf %41, %40 : vector<8x256xf32>
    %cst_18 = arith.constant 5.000000e-01 : f32
    %43 = vector.broadcast %cst_18 : f32 to vector<8x256xf32>
    %44 = arith.addf %42, %43 : vector<8x256xf32>
    %45 = vector.extract_strided_slice %19 {offsets = [40, 0], sizes = [8, 256], strides = [1, 1]} : vector<56x256xf32> to vector<8x256xf32>
    %46 = math.tanh %45 : vector<8x256xf32>
    %cst_19 = arith.constant 5.000000e-01 : f32
    %47 = vector.broadcast %cst_19 : f32 to vector<8x256xf32>
    %48 = arith.mulf %47, %46 : vector<8x256xf32>
    %cst_20 = arith.constant 5.000000e-01 : f32
    %49 = vector.broadcast %cst_20 : f32 to vector<8x256xf32>
    %50 = arith.addf %48, %49 : vector<8x256xf32>
    %51 = arith.mulf %50, %12 : vector<8x256xf32>
    %52 = arith.mulf %44, %38 : vector<8x256xf32>
    %53 = arith.addf %51, %52 : vector<8x256xf32>
    %54 = tpu.concatenate %36, %53 in 0 : vector<8x256xf32>, vector<8x256xf32> -> vector<16x256xf32>
    %cst_21 = arith.constant dense<0.000000e+00> : vector<16x256xf32>
    %55 = tpu.matmul %5, %54, %cst_21 {dimension_numbers = #tpu.dot_dimension_numbers<[1], [0], [0], [1], [0, 0, 1, 1], [], []>} : vector<16x16xf32>, vector<16x256xf32>, vector<16x256xf32> -> vector<16x256xf32>
    %56 = vector.extract_strided_slice %19 {offsets = [48, 0], sizes = [8, 256], strides = [1, 1]} : vector<56x256xf32> to vector<8x256xf32>
    %57 = vector.extract_strided_slice %55 {offsets = [0, 0], sizes = [8, 256], strides = [1, 1]} : vector<16x256xf32> to vector<8x256xf32>
    %58 = arith.addf %56, %57 : vector<8x256xf32>
    %59 = math.tanh %58 : vector<8x256xf32>
    %cst_22 = arith.constant 5.000000e-01 : f32
    %60 = vector.broadcast %cst_22 : f32 to vector<8x256xf32>
    %61 = arith.mulf %60, %59 : vector<8x256xf32>
    %cst_23 = arith.constant 5.000000e-01 : f32
    %62 = vector.broadcast %cst_23 : f32 to vector<8x256xf32>
    %63 = arith.addf %61, %62 : vector<8x256xf32>
    %64 = vector.extract_strided_slice %55 {offsets = [8, 0], sizes = [8, 256], strides = [1, 1]} : vector<16x256xf32> to vector<8x256xf32>
    %65 = math.tanh %64 : vector<8x256xf32>
    %66 = arith.mulf %63, %65 : vector<8x256xf32>
    %67 = tpu.concatenate %53, %3 in 0 : vector<8x256xf32>, vector<1x256xf32> -> vector<9x256xf32>
    %cst_24 = arith.constant dense<0.000000e+00> : vector<8x256xf32>
    %68 = tpu.matmul %8, %67, %cst_24 {dimension_numbers = #tpu.dot_dimension_numbers<[1], [0], [0], [1], [0, 0, 1, 1], [], []>} : vector<8x9xf32>, vector<9x256xf32>, vector<8x256xf32> -> vector<8x256xf32>
    %69 = tpu.concatenate %66, %14, %68, %3 in 0 : vector<8x256xf32>, vector<8x256xf32>, vector<8x256xf32>, vector<1x256xf32> -> vector<25x256xf32>
    %cst_25 = arith.constant dense<0.000000e+00> : vector<56x256xf32>
    %70 = tpu.matmul %6, %69, %cst_25 {dimension_numbers = #tpu.dot_dimension_numbers<[1], [0], [0], [1], [0, 0, 1, 1], [], []>} : vector<56x25xf32>, vector<25x256xf32>, vector<56x256xf32> -> vector<56x256xf32>
    %71 = vector.extract_strided_slice %70 {offsets = [0, 0], sizes = [8, 256], strides = [1, 1]} : vector<56x256xf32> to vector<8x256xf32>
    %72 = math.tanh %71 : vector<8x256xf32>
    %73 = vector.extract_strided_slice %70 {offsets = [8, 0], sizes = [8, 256], strides = [1, 1]} : vector<56x256xf32> to vector<8x256xf32>
    %74 = math.tanh %73 : vector<8x256xf32>
    %cst_26 = arith.constant 5.000000e-01 : f32
    %75 = vector.broadcast %cst_26 : f32 to vector<8x256xf32>
    %76 = arith.mulf %75, %74 : vector<8x256xf32>
    %cst_27 = arith.constant 5.000000e-01 : f32
    %77 = vector.broadcast %cst_27 : f32 to vector<8x256xf32>
    %78 = arith.addf %76, %77 : vector<8x256xf32>
    %79 = vector.extract_strided_slice %70 {offsets = [16, 0], sizes = [8, 256], strides = [1, 1]} : vector<56x256xf32> to vector<8x256xf32>
    %80 = math.tanh %79 : vector<8x256xf32>
    %cst_28 = arith.constant 5.000000e-01 : f32
    %81 = vector.broadcast %cst_28 : f32 to vector<8x256xf32>
    %82 = arith.mulf %81, %80 : vector<8x256xf32>
    %cst_29 = arith.constant 5.000000e-01 : f32
    %83 = vector.broadcast %cst_29 : f32 to vector<8x256xf32>
    %84 = arith.addf %82, %83 : vector<8x256xf32>
    %85 = arith.mulf %84, %15 : vector<8x256xf32>
    %86 = arith.mulf %78, %72 : vector<8x256xf32>
    %87 = arith.addf %85, %86 : vector<8x256xf32>
    %88 = vector.extract_strided_slice %70 {offsets = [24, 0], sizes = [8, 256], strides = [1, 1]} : vector<56x256xf32> to vector<8x256xf32>
    %89 = math.tanh %88 : vector<8x256xf32>
    %90 = vector.extract_strided_slice %70 {offsets = [32, 0], sizes = [8, 256], strides = [1, 1]} : vector<56x256xf32> to vector<8x256xf32>
    %91 = math.tanh %90 : vector<8x256xf32>
    %cst_30 = arith.constant 5.000000e-01 : f32
    %92 = vector.broadcast %cst_30 : f32 to vector<8x256xf32>
    %93 = arith.mulf %92, %91 : vector<8x256xf32>
    %cst_31 = arith.constant 5.000000e-01 : f32
    %94 = vector.broadcast %cst_31 : f32 to vector<8x256xf32>
    %95 = arith.addf %93, %94 : vector<8x256xf32>
    %96 = vector.extract_strided_slice %70 {offsets = [40, 0], sizes = [8, 256], strides = [1, 1]} : vector<56x256xf32> to vector<8x256xf32>
    %97 = math.tanh %96 : vector<8x256xf32>
    %cst_32 = arith.constant 5.000000e-01 : f32
    %98 = vector.broadcast %cst_32 : f32 to vector<8x256xf32>
    %99 = arith.mulf %98, %97 : vector<8x256xf32>
    %cst_33 = arith.constant 5.000000e-01 : f32
    %100 = vector.broadcast %cst_33 : f32 to vector<8x256xf32>
    %101 = arith.addf %99, %100 : vector<8x256xf32>
    %102 = arith.mulf %101, %68 : vector<8x256xf32>
    %103 = arith.mulf %95, %89 : vector<8x256xf32>
    %104 = arith.addf %102, %103 : vector<8x256xf32>
    %105 = tpu.concatenate %87, %104 in 0 : vector<8x256xf32>, vector<8x256xf32> -> vector<16x256xf32>
    %cst_34 = arith.constant dense<0.000000e+00> : vector<16x256xf32>
    %106 = tpu.matmul %7, %105, %cst_34 {dimension_numbers = #tpu.dot_dimension_numbers<[1], [0], [0], [1], [0, 0, 1, 1], [], []>} : vector<16x16xf32>, vector<16x256xf32>, vector<16x256xf32> -> vector<16x256xf32>
    %107 = vector.extract_strided_slice %70 {offsets = [48, 0], sizes = [8, 256], strides = [1, 1]} : vector<56x256xf32> to vector<8x256xf32>
    %108 = vector.extract_strided_slice %106 {offsets = [0, 0], sizes = [8, 256], strides = [1, 1]} : vector<16x256xf32> to vector<8x256xf32>
    %109 = arith.addf %107, %108 : vector<8x256xf32>
    %110 = math.tanh %109 : vector<8x256xf32>
    %cst_35 = arith.constant 5.000000e-01 : f32
    %111 = vector.broadcast %cst_35 : f32 to vector<8x256xf32>
    %112 = arith.mulf %111, %110 : vector<8x256xf32>
    %cst_36 = arith.constant 5.000000e-01 : f32
    %113 = vector.broadcast %cst_36 : f32 to vector<8x256xf32>
    %114 = arith.addf %112, %113 : vector<8x256xf32>
    %115 = vector.extract_strided_slice %106 {offsets = [8, 0], sizes = [8, 256], strides = [1, 1]} : vector<16x256xf32> to vector<8x256xf32>
    %116 = math.tanh %115 : vector<8x256xf32>
    %117 = arith.mulf %114, %116 : vector<8x256xf32>
    %118 = tpu.concatenate %104, %3 in 0 : vector<8x256xf32>, vector<1x256xf32> -> vector<9x256xf32>
    %cst_37 = arith.constant dense<0.000000e+00> : vector<8x256xf32>
    %119 = tpu.matmul %9, %118, %cst_37 {dimension_numbers = #tpu.dot_dimension_numbers<[1], [0], [0], [1], [0, 0, 1, 1], [], []>} : vector<8x9xf32>, vector<9x256xf32>, vector<8x256xf32> -> vector<8x256xf32>
    %c1 = arith.constant 1 : index
    %c0_38 = arith.constant 0 : index
    %c0_39 = arith.constant 0 : index
    %120 = vector.load %arg2[%c1, %c0_38, %c0_39] : memref<4x4x256xf32, #tpu.memory_space<vmem>>, vector<1x4x256xf32>
    %121 = vector.shape_cast %120 : vector<1x4x256xf32> to vector<4x256xf32>
    %122 = tpu.concatenate %121, %66, %119, %3 in 0 : vector<4x256xf32>, vector<8x256xf32>, vector<8x256xf32>, vector<1x256xf32> -> vector<21x256xf32>
    %cst_40 = arith.constant dense<0.000000e+00> : vector<56x256xf32>
    %123 = tpu.matmul %4, %122, %cst_40 {dimension_numbers = #tpu.dot_dimension_numbers<[1], [0], [0], [1], [0, 0, 1, 1], [], []>} : vector<56x21xf32>, vector<21x256xf32>, vector<56x256xf32> -> vector<56x256xf32>
    %124 = vector.extract_strided_slice %123 {offsets = [0, 0], sizes = [8, 256], strides = [1, 1]} : vector<56x256xf32> to vector<8x256xf32>
    %125 = math.tanh %124 : vector<8x256xf32>
    %126 = vector.extract_strided_slice %123 {offsets = [8, 0], sizes = [8, 256], strides = [1, 1]} : vector<56x256xf32> to vector<8x256xf32>
    %127 = math.tanh %126 : vector<8x256xf32>
    %cst_41 = arith.constant 5.000000e-01 : f32
    %128 = vector.broadcast %cst_41 : f32 to vector<8x256xf32>
    %129 = arith.mulf %128, %127 : vector<8x256xf32>
    %cst_42 = arith.constant 5.000000e-01 : f32
    %130 = vector.broadcast %cst_42 : f32 to vector<8x256xf32>
    %131 = arith.addf %129, %130 : vector<8x256xf32>
    %132 = vector.extract_strided_slice %123 {offsets = [16, 0], sizes = [8, 256], strides = [1, 1]} : vector<56x256xf32> to vector<8x256xf32>
    %133 = math.tanh %132 : vector<8x256xf32>
    %cst_43 = arith.constant 5.000000e-01 : f32
    %134 = vector.broadcast %cst_43 : f32 to vector<8x256xf32>
    %135 = arith.mulf %134, %133 : vector<8x256xf32>
    %cst_44 = arith.constant 5.000000e-01 : f32
    %136 = vector.broadcast %cst_44 : f32 to vector<8x256xf32>
    %137 = arith.addf %135, %136 : vector<8x256xf32>
    %138 = arith.mulf %137, %36 : vector<8x256xf32>
    %139 = arith.mulf %131, %125 : vector<8x256xf32>
    %140 = arith.addf %138, %139 : vector<8x256xf32>
    %141 = vector.extract_strided_slice %123 {offsets = [24, 0], sizes = [8, 256], strides = [1, 1]} : vector<56x256xf32> to vector<8x256xf32>
    %142 = math.tanh %141 : vector<8x256xf32>
    %143 = vector.extract_strided_slice %123 {offsets = [32, 0], sizes = [8, 256], strides = [1, 1]} : vector<56x256xf32> to vector<8x256xf32>
    %144 = math.tanh %143 : vector<8x256xf32>
    %cst_45 = arith.constant 5.000000e-01 : f32
    %145 = vector.broadcast %cst_45 : f32 to vector<8x256xf32>
    %146 = arith.mulf %145, %144 : vector<8x256xf32>
    %cst_46 = arith.constant 5.000000e-01 : f32
    %147 = vector.broadcast %cst_46 : f32 to vector<8x256xf32>
    %148 = arith.addf %146, %147 : vector<8x256xf32>
    %149 = vector.extract_strided_slice %123 {offsets = [40, 0], sizes = [8, 256], strides = [1, 1]} : vector<56x256xf32> to vector<8x256xf32>
    %150 = math.tanh %149 : vector<8x256xf32>
    %cst_47 = arith.constant 5.000000e-01 : f32
    %151 = vector.broadcast %cst_47 : f32 to vector<8x256xf32>
    %152 = arith.mulf %151, %150 : vector<8x256xf32>
    %cst_48 = arith.constant 5.000000e-01 : f32
    %153 = vector.broadcast %cst_48 : f32 to vector<8x256xf32>
    %154 = arith.addf %152, %153 : vector<8x256xf32>
    %155 = arith.mulf %154, %119 : vector<8x256xf32>
    %156 = arith.mulf %148, %142 : vector<8x256xf32>
    %157 = arith.addf %155, %156 : vector<8x256xf32>
    %158 = tpu.concatenate %140, %157 in 0 : vector<8x256xf32>, vector<8x256xf32> -> vector<16x256xf32>
    %cst_49 = arith.constant dense<0.000000e+00> : vector<16x256xf32>
    %159 = tpu.matmul %5, %158, %cst_49 {dimension_numbers = #tpu.dot_dimension_numbers<[1], [0], [0], [1], [0, 0, 1, 1], [], []>} : vector<16x16xf32>, vector<16x256xf32>, vector<16x256xf32> -> vector<16x256xf32>
    %160 = vector.extract_strided_slice %123 {offsets = [48, 0], sizes = [8, 256], strides = [1, 1]} : vector<56x256xf32> to vector<8x256xf32>
    %161 = vector.extract_strided_slice %159 {offsets = [0, 0], sizes = [8, 256], strides = [1, 1]} : vector<16x256xf32> to vector<8x256xf32>
    %162 = arith.addf %160, %161 : vector<8x256xf32>
    %163 = math.tanh %162 : vector<8x256xf32>
    %cst_50 = arith.constant 5.000000e-01 : f32
    %164 = vector.broadcast %cst_50 : f32 to vector<8x256xf32>
    %165 = arith.mulf %164, %163 : vector<8x256xf32>
    %cst_51 = arith.constant 5.000000e-01 : f32
    %166 = vector.broadcast %cst_51 : f32 to vector<8x256xf32>
    %167 = arith.addf %165, %166 : vector<8x256xf32>
    %168 = vector.extract_strided_slice %159 {offsets = [8, 0], sizes = [8, 256], strides = [1, 1]} : vector<16x256xf32> to vector<8x256xf32>
    %169 = math.tanh %168 : vector<8x256xf32>
    %170 = arith.mulf %167, %169 : vector<8x256xf32>
    %171 = tpu.concatenate %157, %3 in 0 : vector<8x256xf32>, vector<1x256xf32> -> vector<9x256xf32>
    %cst_52 = arith.constant dense<0.000000e+00> : vector<8x256xf32>
    %172 = tpu.matmul %8, %171, %cst_52 {dimension_numbers = #tpu.dot_dimension_numbers<[1], [0], [0], [1], [0, 0, 1, 1], [], []>} : vector<8x9xf32>, vector<9x256xf32>, vector<8x256xf32> -> vector<8x256xf32>
    %173 = tpu.concatenate %170, %117, %172, %3 in 0 : vector<8x256xf32>, vector<8x256xf32>, vector<8x256xf32>, vector<1x256xf32> -> vector<25x256xf32>
    %cst_53 = arith.constant dense<0.000000e+00> : vector<56x256xf32>
    %174 = tpu.matmul %6, %173, %cst_53 {dimension_numbers = #tpu.dot_dimension_numbers<[1], [0], [0], [1], [0, 0, 1, 1], [], []>} : vector<56x25xf32>, vector<25x256xf32>, vector<56x256xf32> -> vector<56x256xf32>
    %175 = vector.extract_strided_slice %174 {offsets = [0, 0], sizes = [8, 256], strides = [1, 1]} : vector<56x256xf32> to vector<8x256xf32>
    %176 = math.tanh %175 : vector<8x256xf32>
    %177 = vector.extract_strided_slice %174 {offsets = [8, 0], sizes = [8, 256], strides = [1, 1]} : vector<56x256xf32> to vector<8x256xf32>
    %178 = math.tanh %177 : vector<8x256xf32>
    %cst_54 = arith.constant 5.000000e-01 : f32
    %179 = vector.broadcast %cst_54 : f32 to vector<8x256xf32>
    %180 = arith.mulf %179, %178 : vector<8x256xf32>
    %cst_55 = arith.constant 5.000000e-01 : f32
    %181 = vector.broadcast %cst_55 : f32 to vector<8x256xf32>
    %182 = arith.addf %180, %181 : vector<8x256xf32>
    %183 = vector.extract_strided_slice %174 {offsets = [16, 0], sizes = [8, 256], strides = [1, 1]} : vector<56x256xf32> to vector<8x256xf32>
    %184 = math.tanh %183 : vector<8x256xf32>
    %cst_56 = arith.constant 5.000000e-01 : f32
    %185 = vector.broadcast %cst_56 : f32 to vector<8x256xf32>
    %186 = arith.mulf %185, %184 : vector<8x256xf32>
    %cst_57 = arith.constant 5.000000e-01 : f32
    %187 = vector.broadcast %cst_57 : f32 to vector<8x256xf32>
    %188 = arith.addf %186, %187 : vector<8x256xf32>
    %189 = arith.mulf %188, %87 : vector<8x256xf32>
    %190 = arith.mulf %182, %176 : vector<8x256xf32>
    %191 = arith.addf %189, %190 : vector<8x256xf32>
    %192 = vector.extract_strided_slice %174 {offsets = [24, 0], sizes = [8, 256], strides = [1, 1]} : vector<56x256xf32> to vector<8x256xf32>
    %193 = math.tanh %192 : vector<8x256xf32>
    %194 = vector.extract_strided_slice %174 {offsets = [32, 0], sizes = [8, 256], strides = [1, 1]} : vector<56x256xf32> to vector<8x256xf32>
    %195 = math.tanh %194 : vector<8x256xf32>
    %cst_58 = arith.constant 5.000000e-01 : f32
    %196 = vector.broadcast %cst_58 : f32 to vector<8x256xf32>
    %197 = arith.mulf %196, %195 : vector<8x256xf32>
    %cst_59 = arith.constant 5.000000e-01 : f32
    %198 = vector.broadcast %cst_59 : f32 to vector<8x256xf32>
    %199 = arith.addf %197, %198 : vector<8x256xf32>
    %200 = vector.extract_strided_slice %174 {offsets = [40, 0], sizes = [8, 256], strides = [1, 1]} : vector<56x256xf32> to vector<8x256xf32>
    %201 = math.tanh %200 : vector<8x256xf32>
    %cst_60 = arith.constant 5.000000e-01 : f32
    %202 = vector.broadcast %cst_60 : f32 to vector<8x256xf32>
    %203 = arith.mulf %202, %201 : vector<8x256xf32>
    %cst_61 = arith.constant 5.000000e-01 : f32
    %204 = vector.broadcast %cst_61 : f32 to vector<8x256xf32>
    %205 = arith.addf %203, %204 : vector<8x256xf32>
    %206 = arith.mulf %205, %172 : vector<8x256xf32>
    %207 = arith.mulf %199, %193 : vector<8x256xf32>
    %208 = arith.addf %206, %207 : vector<8x256xf32>
    %209 = tpu.concatenate %191, %208 in 0 : vector<8x256xf32>, vector<8x256xf32> -> vector<16x256xf32>
    %cst_62 = arith.constant dense<0.000000e+00> : vector<16x256xf32>
    %210 = tpu.matmul %7, %209, %cst_62 {dimension_numbers = #tpu.dot_dimension_numbers<[1], [0], [0], [1], [0, 0, 1, 1], [], []>} : vector<16x16xf32>, vector<16x256xf32>, vector<16x256xf32> -> vector<16x256xf32>
    %211 = vector.extract_strided_slice %174 {offsets = [48, 0], sizes = [8, 256], strides = [1, 1]} : vector<56x256xf32> to vector<8x256xf32>
    %212 = vector.extract_strided_slice %210 {offsets = [0, 0], sizes = [8, 256], strides = [1, 1]} : vector<16x256xf32> to vector<8x256xf32>
    %213 = arith.addf %211, %212 : vector<8x256xf32>
    %214 = math.tanh %213 : vector<8x256xf32>
    %cst_63 = arith.constant 5.000000e-01 : f32
    %215 = vector.broadcast %cst_63 : f32 to vector<8x256xf32>
    %216 = arith.mulf %215, %214 : vector<8x256xf32>
    %cst_64 = arith.constant 5.000000e-01 : f32
    %217 = vector.broadcast %cst_64 : f32 to vector<8x256xf32>
    %218 = arith.addf %216, %217 : vector<8x256xf32>
    %219 = vector.extract_strided_slice %210 {offsets = [8, 0], sizes = [8, 256], strides = [1, 1]} : vector<16x256xf32> to vector<8x256xf32>
    %220 = math.tanh %219 : vector<8x256xf32>
    %221 = arith.mulf %218, %220 : vector<8x256xf32>
    %222 = tpu.concatenate %208, %3 in 0 : vector<8x256xf32>, vector<1x256xf32> -> vector<9x256xf32>
    %cst_65 = arith.constant dense<0.000000e+00> : vector<8x256xf32>
    %223 = tpu.matmul %9, %222, %cst_65 {dimension_numbers = #tpu.dot_dimension_numbers<[1], [0], [0], [1], [0, 0, 1, 1], [], []>} : vector<8x9xf32>, vector<9x256xf32>, vector<8x256xf32> -> vector<8x256xf32>
    %c2 = arith.constant 2 : index
    %c0_66 = arith.constant 0 : index
    %c0_67 = arith.constant 0 : index
    %224 = vector.load %arg2[%c2, %c0_66, %c0_67] : memref<4x4x256xf32, #tpu.memory_space<vmem>>, vector<1x4x256xf32>
    %225 = vector.shape_cast %224 : vector<1x4x256xf32> to vector<4x256xf32>
    %226 = tpu.concatenate %225, %170, %223, %3 in 0 : vector<4x256xf32>, vector<8x256xf32>, vector<8x256xf32>, vector<1x256xf32> -> vector<21x256xf32>
    %cst_68 = arith.constant dense<0.000000e+00> : vector<56x256xf32>
    %227 = tpu.matmul %4, %226, %cst_68 {dimension_numbers = #tpu.dot_dimension_numbers<[1], [0], [0], [1], [0, 0, 1, 1], [], []>} : vector<56x21xf32>, vector<21x256xf32>, vector<56x256xf32> -> vector<56x256xf32>
    %228 = vector.extract_strided_slice %227 {offsets = [0, 0], sizes = [8, 256], strides = [1, 1]} : vector<56x256xf32> to vector<8x256xf32>
    %229 = math.tanh %228 : vector<8x256xf32>
    %230 = vector.extract_strided_slice %227 {offsets = [8, 0], sizes = [8, 256], strides = [1, 1]} : vector<56x256xf32> to vector<8x256xf32>
    %231 = math.tanh %230 : vector<8x256xf32>
    %cst_69 = arith.constant 5.000000e-01 : f32
    %232 = vector.broadcast %cst_69 : f32 to vector<8x256xf32>
    %233 = arith.mulf %232, %231 : vector<8x256xf32>
    %cst_70 = arith.constant 5.000000e-01 : f32
    %234 = vector.broadcast %cst_70 : f32 to vector<8x256xf32>
    %235 = arith.addf %233, %234 : vector<8x256xf32>
    %236 = vector.extract_strided_slice %227 {offsets = [16, 0], sizes = [8, 256], strides = [1, 1]} : vector<56x256xf32> to vector<8x256xf32>
    %237 = math.tanh %236 : vector<8x256xf32>
    %cst_71 = arith.constant 5.000000e-01 : f32
    %238 = vector.broadcast %cst_71 : f32 to vector<8x256xf32>
    %239 = arith.mulf %238, %237 : vector<8x256xf32>
    %cst_72 = arith.constant 5.000000e-01 : f32
    %240 = vector.broadcast %cst_72 : f32 to vector<8x256xf32>
    %241 = arith.addf %239, %240 : vector<8x256xf32>
    %242 = arith.mulf %241, %140 : vector<8x256xf32>
    %243 = arith.mulf %235, %229 : vector<8x256xf32>
    %244 = arith.addf %242, %243 : vector<8x256xf32>
    %245 = vector.extract_strided_slice %227 {offsets = [24, 0], sizes = [8, 256], strides = [1, 1]} : vector<56x256xf32> to vector<8x256xf32>
    %246 = math.tanh %245 : vector<8x256xf32>
    %247 = vector.extract_strided_slice %227 {offsets = [32, 0], sizes = [8, 256], strides = [1, 1]} : vector<56x256xf32> to vector<8x256xf32>
    %248 = math.tanh %247 : vector<8x256xf32>
    %cst_73 = arith.constant 5.000000e-01 : f32
    %249 = vector.broadcast %cst_73 : f32 to vector<8x256xf32>
    %250 = arith.mulf %249, %248 : vector<8x256xf32>
    %cst_74 = arith.constant 5.000000e-01 : f32
    %251 = vector.broadcast %cst_74 : f32 to vector<8x256xf32>
    %252 = arith.addf %250, %251 : vector<8x256xf32>
    %253 = vector.extract_strided_slice %227 {offsets = [40, 0], sizes = [8, 256], strides = [1, 1]} : vector<56x256xf32> to vector<8x256xf32>
    %254 = math.tanh %253 : vector<8x256xf32>
    %cst_75 = arith.constant 5.000000e-01 : f32
    %255 = vector.broadcast %cst_75 : f32 to vector<8x256xf32>
    %256 = arith.mulf %255, %254 : vector<8x256xf32>
    %cst_76 = arith.constant 5.000000e-01 : f32
    %257 = vector.broadcast %cst_76 : f32 to vector<8x256xf32>
    %258 = arith.addf %256, %257 : vector<8x256xf32>
    %259 = arith.mulf %258, %223 : vector<8x256xf32>
    %260 = arith.mulf %252, %246 : vector<8x256xf32>
    %261 = arith.addf %259, %260 : vector<8x256xf32>
    %262 = tpu.concatenate %244, %261 in 0 : vector<8x256xf32>, vector<8x256xf32> -> vector<16x256xf32>
    %cst_77 = arith.constant dense<0.000000e+00> : vector<16x256xf32>
    %263 = tpu.matmul %5, %262, %cst_77 {dimension_numbers = #tpu.dot_dimension_numbers<[1], [0], [0], [1], [0, 0, 1, 1], [], []>} : vector<16x16xf32>, vector<16x256xf32>, vector<16x256xf32> -> vector<16x256xf32>
    %264 = vector.extract_strided_slice %227 {offsets = [48, 0], sizes = [8, 256], strides = [1, 1]} : vector<56x256xf32> to vector<8x256xf32>
    %265 = vector.extract_strided_slice %263 {offsets = [0, 0], sizes = [8, 256], strides = [1, 1]} : vector<16x256xf32> to vector<8x256xf32>
    %266 = arith.addf %264, %265 : vector<8x256xf32>
    %267 = math.tanh %266 : vector<8x256xf32>
    %cst_78 = arith.constant 5.000000e-01 : f32
    %268 = vector.broadcast %cst_78 : f32 to vector<8x256xf32>
    %269 = arith.mulf %268, %267 : vector<8x256xf32>
    %cst_79 = arith.constant 5.000000e-01 : f32
    %270 = vector.broadcast %cst_79 : f32 to vector<8x256xf32>
    %271 = arith.addf %269, %270 : vector<8x256xf32>
    %272 = vector.extract_strided_slice %263 {offsets = [8, 0], sizes = [8, 256], strides = [1, 1]} : vector<16x256xf32> to vector<8x256xf32>
    %273 = math.tanh %272 : vector<8x256xf32>
    %274 = arith.mulf %271, %273 : vector<8x256xf32>
    %275 = tpu.concatenate %261, %3 in 0 : vector<8x256xf32>, vector<1x256xf32> -> vector<9x256xf32>
    %cst_80 = arith.constant dense<0.000000e+00> : vector<8x256xf32>
    %276 = tpu.matmul %8, %275, %cst_80 {dimension_numbers = #tpu.dot_dimension_numbers<[1], [0], [0], [1], [0, 0, 1, 1], [], []>} : vector<8x9xf32>, vector<9x256xf32>, vector<8x256xf32> -> vector<8x256xf32>
    %277 = tpu.concatenate %274, %221, %276, %3 in 0 : vector<8x256xf32>, vector<8x256xf32>, vector<8x256xf32>, vector<1x256xf32> -> vector<25x256xf32>
    %cst_81 = arith.constant dense<0.000000e+00> : vector<56x256xf32>
    %278 = tpu.matmul %6, %277, %cst_81 {dimension_numbers = #tpu.dot_dimension_numbers<[1], [0], [0], [1], [0, 0, 1, 1], [], []>} : vector<56x25xf32>, vector<25x256xf32>, vector<56x256xf32> -> vector<56x256xf32>
    %279 = vector.extract_strided_slice %278 {offsets = [0, 0], sizes = [8, 256], strides = [1, 1]} : vector<56x256xf32> to vector<8x256xf32>
    %280 = math.tanh %279 : vector<8x256xf32>
    %281 = vector.extract_strided_slice %278 {offsets = [8, 0], sizes = [8, 256], strides = [1, 1]} : vector<56x256xf32> to vector<8x256xf32>
    %282 = math.tanh %281 : vector<8x256xf32>
    %cst_82 = arith.constant 5.000000e-01 : f32
    %283 = vector.broadcast %cst_82 : f32 to vector<8x256xf32>
    %284 = arith.mulf %283, %282 : vector<8x256xf32>
    %cst_83 = arith.constant 5.000000e-01 : f32
    %285 = vector.broadcast %cst_83 : f32 to vector<8x256xf32>
    %286 = arith.addf %284, %285 : vector<8x256xf32>
    %287 = vector.extract_strided_slice %278 {offsets = [16, 0], sizes = [8, 256], strides = [1, 1]} : vector<56x256xf32> to vector<8x256xf32>
    %288 = math.tanh %287 : vector<8x256xf32>
    %cst_84 = arith.constant 5.000000e-01 : f32
    %289 = vector.broadcast %cst_84 : f32 to vector<8x256xf32>
    %290 = arith.mulf %289, %288 : vector<8x256xf32>
    %cst_85 = arith.constant 5.000000e-01 : f32
    %291 = vector.broadcast %cst_85 : f32 to vector<8x256xf32>
    %292 = arith.addf %290, %291 : vector<8x256xf32>
    %293 = arith.mulf %292, %191 : vector<8x256xf32>
    %294 = arith.mulf %286, %280 : vector<8x256xf32>
    %295 = arith.addf %293, %294 : vector<8x256xf32>
    %296 = vector.extract_strided_slice %278 {offsets = [24, 0], sizes = [8, 256], strides = [1, 1]} : vector<56x256xf32> to vector<8x256xf32>
    %297 = math.tanh %296 : vector<8x256xf32>
    %298 = vector.extract_strided_slice %278 {offsets = [32, 0], sizes = [8, 256], strides = [1, 1]} : vector<56x256xf32> to vector<8x256xf32>
    %299 = math.tanh %298 : vector<8x256xf32>
    %cst_86 = arith.constant 5.000000e-01 : f32
    %300 = vector.broadcast %cst_86 : f32 to vector<8x256xf32>
    %301 = arith.mulf %300, %299 : vector<8x256xf32>
    %cst_87 = arith.constant 5.000000e-01 : f32
    %302 = vector.broadcast %cst_87 : f32 to vector<8x256xf32>
    %303 = arith.addf %301, %302 : vector<8x256xf32>
    %304 = vector.extract_strided_slice %278 {offsets = [40, 0], sizes = [8, 256], strides = [1, 1]} : vector<56x256xf32> to vector<8x256xf32>
    %305 = math.tanh %304 : vector<8x256xf32>
    %cst_88 = arith.constant 5.000000e-01 : f32
    %306 = vector.broadcast %cst_88 : f32 to vector<8x256xf32>
    %307 = arith.mulf %306, %305 : vector<8x256xf32>
    %cst_89 = arith.constant 5.000000e-01 : f32
    %308 = vector.broadcast %cst_89 : f32 to vector<8x256xf32>
    %309 = arith.addf %307, %308 : vector<8x256xf32>
    %310 = arith.mulf %309, %276 : vector<8x256xf32>
    %311 = arith.mulf %303, %297 : vector<8x256xf32>
    %312 = arith.addf %310, %311 : vector<8x256xf32>
    %313 = tpu.concatenate %295, %312 in 0 : vector<8x256xf32>, vector<8x256xf32> -> vector<16x256xf32>
    %cst_90 = arith.constant dense<0.000000e+00> : vector<16x256xf32>
    %314 = tpu.matmul %7, %313, %cst_90 {dimension_numbers = #tpu.dot_dimension_numbers<[1], [0], [0], [1], [0, 0, 1, 1], [], []>} : vector<16x16xf32>, vector<16x256xf32>, vector<16x256xf32> -> vector<16x256xf32>
    %315 = vector.extract_strided_slice %278 {offsets = [48, 0], sizes = [8, 256], strides = [1, 1]} : vector<56x256xf32> to vector<8x256xf32>
    %316 = vector.extract_strided_slice %314 {offsets = [0, 0], sizes = [8, 256], strides = [1, 1]} : vector<16x256xf32> to vector<8x256xf32>
    %317 = arith.addf %315, %316 : vector<8x256xf32>
    %318 = math.tanh %317 : vector<8x256xf32>
    %cst_91 = arith.constant 5.000000e-01 : f32
    %319 = vector.broadcast %cst_91 : f32 to vector<8x256xf32>
    %320 = arith.mulf %319, %318 : vector<8x256xf32>
    %cst_92 = arith.constant 5.000000e-01 : f32
    %321 = vector.broadcast %cst_92 : f32 to vector<8x256xf32>
    %322 = arith.addf %320, %321 : vector<8x256xf32>
    %323 = vector.extract_strided_slice %314 {offsets = [8, 0], sizes = [8, 256], strides = [1, 1]} : vector<16x256xf32> to vector<8x256xf32>
    %324 = math.tanh %323 : vector<8x256xf32>
    %325 = arith.mulf %322, %324 : vector<8x256xf32>
    %326 = tpu.concatenate %312, %3 in 0 : vector<8x256xf32>, vector<1x256xf32> -> vector<9x256xf32>
    %cst_93 = arith.constant dense<0.000000e+00> : vector<8x256xf32>
    %327 = tpu.matmul %9, %326, %cst_93 {dimension_numbers = #tpu.dot_dimension_numbers<[1], [0], [0], [1], [0, 0, 1, 1], [], []>} : vector<8x9xf32>, vector<9x256xf32>, vector<8x256xf32> -> vector<8x256xf32>
    %c3 = arith.constant 3 : index
    %c0_94 = arith.constant 0 : index
    %c0_95 = arith.constant 0 : index
    %328 = vector.load %arg2[%c3, %c0_94, %c0_95] : memref<4x4x256xf32, #tpu.memory_space<vmem>>, vector<1x4x256xf32>
    %329 = vector.shape_cast %328 : vector<1x4x256xf32> to vector<4x256xf32>
    %330 = tpu.concatenate %329, %274, %327, %3 in 0 : vector<4x256xf32>, vector<8x256xf32>, vector<8x256xf32>, vector<1x256xf32> -> vector<21x256xf32>
    %cst_96 = arith.constant dense<0.000000e+00> : vector<56x256xf32>
    %331 = tpu.matmul %4, %330, %cst_96 {dimension_numbers = #tpu.dot_dimension_numbers<[1], [0], [0], [1], [0, 0, 1, 1], [], []>} : vector<56x21xf32>, vector<21x256xf32>, vector<56x256xf32> -> vector<56x256xf32>
    %332 = vector.extract_strided_slice %331 {offsets = [0, 0], sizes = [8, 256], strides = [1, 1]} : vector<56x256xf32> to vector<8x256xf32>
    %333 = math.tanh %332 : vector<8x256xf32>
    %334 = vector.extract_strided_slice %331 {offsets = [8, 0], sizes = [8, 256], strides = [1, 1]} : vector<56x256xf32> to vector<8x256xf32>
    %335 = math.tanh %334 : vector<8x256xf32>
    %cst_97 = arith.constant 5.000000e-01 : f32
    %336 = vector.broadcast %cst_97 : f32 to vector<8x256xf32>
    %337 = arith.mulf %336, %335 : vector<8x256xf32>
    %cst_98 = arith.constant 5.000000e-01 : f32
    %338 = vector.broadcast %cst_98 : f32 to vector<8x256xf32>
    %339 = arith.addf %337, %338 : vector<8x256xf32>
    %340 = vector.extract_strided_slice %331 {offsets = [16, 0], sizes = [8, 256], strides = [1, 1]} : vector<56x256xf32> to vector<8x256xf32>
    %341 = math.tanh %340 : vector<8x256xf32>
    %cst_99 = arith.constant 5.000000e-01 : f32
    %342 = vector.broadcast %cst_99 : f32 to vector<8x256xf32>
    %343 = arith.mulf %342, %341 : vector<8x256xf32>
    %cst_100 = arith.constant 5.000000e-01 : f32
    %344 = vector.broadcast %cst_100 : f32 to vector<8x256xf32>
    %345 = arith.addf %343, %344 : vector<8x256xf32>
    %346 = arith.mulf %345, %244 : vector<8x256xf32>
    %347 = arith.mulf %339, %333 : vector<8x256xf32>
    %348 = arith.addf %346, %347 : vector<8x256xf32>
    %349 = vector.extract_strided_slice %331 {offsets = [24, 0], sizes = [8, 256], strides = [1, 1]} : vector<56x256xf32> to vector<8x256xf32>
    %350 = math.tanh %349 : vector<8x256xf32>
    %351 = vector.extract_strided_slice %331 {offsets = [32, 0], sizes = [8, 256], strides = [1, 1]} : vector<56x256xf32> to vector<8x256xf32>
    %352 = math.tanh %351 : vector<8x256xf32>
    %cst_101 = arith.constant 5.000000e-01 : f32
    %353 = vector.broadcast %cst_101 : f32 to vector<8x256xf32>
    %354 = arith.mulf %353, %352 : vector<8x256xf32>
    %cst_102 = arith.constant 5.000000e-01 : f32
    %355 = vector.broadcast %cst_102 : f32 to vector<8x256xf32>
    %356 = arith.addf %354, %355 : vector<8x256xf32>
    %357 = vector.extract_strided_slice %331 {offsets = [40, 0], sizes = [8, 256], strides = [1, 1]} : vector<56x256xf32> to vector<8x256xf32>
    %358 = math.tanh %357 : vector<8x256xf32>
    %cst_103 = arith.constant 5.000000e-01 : f32
    %359 = vector.broadcast %cst_103 : f32 to vector<8x256xf32>
    %360 = arith.mulf %359, %358 : vector<8x256xf32>
    %cst_104 = arith.constant 5.000000e-01 : f32
    %361 = vector.broadcast %cst_104 : f32 to vector<8x256xf32>
    %362 = arith.addf %360, %361 : vector<8x256xf32>
    %363 = arith.mulf %362, %327 : vector<8x256xf32>
    %364 = arith.mulf %356, %350 : vector<8x256xf32>
    %365 = arith.addf %363, %364 : vector<8x256xf32>
    %366 = tpu.concatenate %348, %365 in 0 : vector<8x256xf32>, vector<8x256xf32> -> vector<16x256xf32>
    %cst_105 = arith.constant dense<0.000000e+00> : vector<16x256xf32>
    %367 = tpu.matmul %5, %366, %cst_105 {dimension_numbers = #tpu.dot_dimension_numbers<[1], [0], [0], [1], [0, 0, 1, 1], [], []>} : vector<16x16xf32>, vector<16x256xf32>, vector<16x256xf32> -> vector<16x256xf32>
    %368 = vector.extract_strided_slice %331 {offsets = [48, 0], sizes = [8, 256], strides = [1, 1]} : vector<56x256xf32> to vector<8x256xf32>
    %369 = vector.extract_strided_slice %367 {offsets = [0, 0], sizes = [8, 256], strides = [1, 1]} : vector<16x256xf32> to vector<8x256xf32>
    %370 = arith.addf %368, %369 : vector<8x256xf32>
    %371 = math.tanh %370 : vector<8x256xf32>
    %cst_106 = arith.constant 5.000000e-01 : f32
    %372 = vector.broadcast %cst_106 : f32 to vector<8x256xf32>
    %373 = arith.mulf %372, %371 : vector<8x256xf32>
    %cst_107 = arith.constant 5.000000e-01 : f32
    %374 = vector.broadcast %cst_107 : f32 to vector<8x256xf32>
    %375 = arith.addf %373, %374 : vector<8x256xf32>
    %376 = vector.extract_strided_slice %367 {offsets = [8, 0], sizes = [8, 256], strides = [1, 1]} : vector<16x256xf32> to vector<8x256xf32>
    %377 = math.tanh %376 : vector<8x256xf32>
    %378 = arith.mulf %375, %377 : vector<8x256xf32>
    %379 = tpu.concatenate %365, %3 in 0 : vector<8x256xf32>, vector<1x256xf32> -> vector<9x256xf32>
    %cst_108 = arith.constant dense<0.000000e+00> : vector<8x256xf32>
    %380 = tpu.matmul %8, %379, %cst_108 {dimension_numbers = #tpu.dot_dimension_numbers<[1], [0], [0], [1], [0, 0, 1, 1], [], []>} : vector<8x9xf32>, vector<9x256xf32>, vector<8x256xf32> -> vector<8x256xf32>
    %381 = tpu.concatenate %378, %325, %380, %3 in 0 : vector<8x256xf32>, vector<8x256xf32>, vector<8x256xf32>, vector<1x256xf32> -> vector<25x256xf32>
    %cst_109 = arith.constant dense<0.000000e+00> : vector<56x256xf32>
    %382 = tpu.matmul %6, %381, %cst_109 {dimension_numbers = #tpu.dot_dimension_numbers<[1], [0], [0], [1], [0, 0, 1, 1], [], []>} : vector<56x25xf32>, vector<25x256xf32>, vector<56x256xf32> -> vector<56x256xf32>
    %383 = vector.extract_strided_slice %382 {offsets = [0, 0], sizes = [8, 256], strides = [1, 1]} : vector<56x256xf32> to vector<8x256xf32>
    %384 = math.tanh %383 : vector<8x256xf32>
    %385 = vector.extract_strided_slice %382 {offsets = [8, 0], sizes = [8, 256], strides = [1, 1]} : vector<56x256xf32> to vector<8x256xf32>
    %386 = math.tanh %385 : vector<8x256xf32>
    %cst_110 = arith.constant 5.000000e-01 : f32
    %387 = vector.broadcast %cst_110 : f32 to vector<8x256xf32>
    %388 = arith.mulf %387, %386 : vector<8x256xf32>
    %cst_111 = arith.constant 5.000000e-01 : f32
    %389 = vector.broadcast %cst_111 : f32 to vector<8x256xf32>
    %390 = arith.addf %388, %389 : vector<8x256xf32>
    %391 = vector.extract_strided_slice %382 {offsets = [16, 0], sizes = [8, 256], strides = [1, 1]} : vector<56x256xf32> to vector<8x256xf32>
    %392 = math.tanh %391 : vector<8x256xf32>
    %cst_112 = arith.constant 5.000000e-01 : f32
    %393 = vector.broadcast %cst_112 : f32 to vector<8x256xf32>
    %394 = arith.mulf %393, %392 : vector<8x256xf32>
    %cst_113 = arith.constant 5.000000e-01 : f32
    %395 = vector.broadcast %cst_113 : f32 to vector<8x256xf32>
    %396 = arith.addf %394, %395 : vector<8x256xf32>
    %397 = arith.mulf %396, %295 : vector<8x256xf32>
    %398 = arith.mulf %390, %384 : vector<8x256xf32>
    %399 = arith.addf %397, %398 : vector<8x256xf32>
    %400 = vector.extract_strided_slice %382 {offsets = [24, 0], sizes = [8, 256], strides = [1, 1]} : vector<56x256xf32> to vector<8x256xf32>
    %401 = math.tanh %400 : vector<8x256xf32>
    %402 = vector.extract_strided_slice %382 {offsets = [32, 0], sizes = [8, 256], strides = [1, 1]} : vector<56x256xf32> to vector<8x256xf32>
    %403 = math.tanh %402 : vector<8x256xf32>
    %cst_114 = arith.constant 5.000000e-01 : f32
    %404 = vector.broadcast %cst_114 : f32 to vector<8x256xf32>
    %405 = arith.mulf %404, %403 : vector<8x256xf32>
    %cst_115 = arith.constant 5.000000e-01 : f32
    %406 = vector.broadcast %cst_115 : f32 to vector<8x256xf32>
    %407 = arith.addf %405, %406 : vector<8x256xf32>
    %408 = vector.extract_strided_slice %382 {offsets = [40, 0], sizes = [8, 256], strides = [1, 1]} : vector<56x256xf32> to vector<8x256xf32>
    %409 = math.tanh %408 : vector<8x256xf32>
    %cst_116 = arith.constant 5.000000e-01 : f32
    %410 = vector.broadcast %cst_116 : f32 to vector<8x256xf32>
    %411 = arith.mulf %410, %409 : vector<8x256xf32>
    %cst_117 = arith.constant 5.000000e-01 : f32
    %412 = vector.broadcast %cst_117 : f32 to vector<8x256xf32>
    %413 = arith.addf %411, %412 : vector<8x256xf32>
    %414 = arith.mulf %413, %380 : vector<8x256xf32>
    %415 = arith.mulf %407, %401 : vector<8x256xf32>
    %416 = arith.addf %414, %415 : vector<8x256xf32>
    %417 = tpu.concatenate %399, %416 in 0 : vector<8x256xf32>, vector<8x256xf32> -> vector<16x256xf32>
    %cst_118 = arith.constant dense<0.000000e+00> : vector<16x256xf32>
    %418 = tpu.matmul %7, %417, %cst_118 {dimension_numbers = #tpu.dot_dimension_numbers<[1], [0], [0], [1], [0, 0, 1, 1], [], []>} : vector<16x16xf32>, vector<16x256xf32>, vector<16x256xf32> -> vector<16x256xf32>
    %419 = vector.extract_strided_slice %382 {offsets = [48, 0], sizes = [8, 256], strides = [1, 1]} : vector<56x256xf32> to vector<8x256xf32>
    %420 = vector.extract_strided_slice %418 {offsets = [0, 0], sizes = [8, 256], strides = [1, 1]} : vector<16x256xf32> to vector<8x256xf32>
    %421 = arith.addf %419, %420 : vector<8x256xf32>
    %422 = math.tanh %421 : vector<8x256xf32>
    %cst_119 = arith.constant 5.000000e-01 : f32
    %423 = vector.broadcast %cst_119 : f32 to vector<8x256xf32>
    %424 = arith.mulf %423, %422 : vector<8x256xf32>
    %cst_120 = arith.constant 5.000000e-01 : f32
    %425 = vector.broadcast %cst_120 : f32 to vector<8x256xf32>
    %426 = arith.addf %424, %425 : vector<8x256xf32>
    %427 = vector.extract_strided_slice %418 {offsets = [8, 0], sizes = [8, 256], strides = [1, 1]} : vector<16x256xf32> to vector<8x256xf32>
    %428 = math.tanh %427 : vector<8x256xf32>
    %429 = arith.mulf %426, %428 : vector<8x256xf32>
    %430 = tpu.concatenate %416, %3 in 0 : vector<8x256xf32>, vector<1x256xf32> -> vector<9x256xf32>
    %cst_121 = arith.constant dense<0.000000e+00> : vector<8x256xf32>
    %431 = tpu.matmul %9, %430, %cst_121 {dimension_numbers = #tpu.dot_dimension_numbers<[1], [0], [0], [1], [0, 0, 1, 1], [], []>} : vector<8x9xf32>, vector<9x256xf32>, vector<8x256xf32> -> vector<8x256xf32>
    %c1_i32 = arith.constant 1 : i32
    %432 = arith.cmpi eq, %arg1, %c1_i32 : i32
    %433 = arith.select %432, %416, %431 : vector<8x256xf32>
    %434 = tpu.concatenate %378, %433, %348, %429, %399 in 0 : vector<8x256xf32>, vector<8x256xf32>, vector<8x256xf32>, vector<8x256xf32>, vector<8x256xf32> -> vector<40x256xf32>
    %c0_122 = arith.constant 0 : index
    %c0_123 = arith.constant 0 : index
    %435 = vector.load %arg4[%c0_122, %c0_123] : memref<40x256xf32, #tpu.memory_space<vmem>>, vector<40x256xf32>
    tpu.vector_store %arg4[%c0_122, %c0_123], %434 {strides = array<i32>} : memref<40x256xf32, #tpu.memory_space<vmem>>, vector<40x256xf32>,
    return
  }
  func.func @transform_0(%arg0: i32, %arg1: i32) -> (i32, i32, i32) {
    %c0_i32 = arith.constant 0 : i32
    %c0_i32_0 = arith.constant 0 : i32
    return %arg1, %c0_i32, %arg0 : i32, i32, i32
  }
  func.func @transform_1(%arg0: i32, %arg1: i32) -> (i32, i32) {
    %c0_i32 = arith.constant 0 : i32
    %c0_i32_0 = arith.constant 0 : i32
    %c0_i32_1 = arith.constant 0 : i32
    return %c0_i32, %c0_i32_0 : i32, i32
  }
  func.func @transform_2(%arg0: i32, %arg1: i32) -> (i32, i32) {
    %c0_i32 = arith.constant 0 : i32
    %c0_i32_0 = arith.constant 0 : i32
    return %c0_i32, %arg0 : i32, i32
  }
}

</mosaic_0001>

<bundles_post_ra>
// kernel: tpu_custom_call.1
= control target key start
LH: loop header
LB: loop body
LE: loop exit
PB: predicated region body
PF: predicated region fallthrough
CT: control target
= control target key end

     0   :  { %7 = vsyncpa [#allocation4], 0  ;;  %s4678_s0 = inlined_call_operand.vmem [shape: f32[8,4,512], index: 0, kind: input, shape index: {}]   ;;  %s4679_s1 = inlined_call_operand.vmem [shape: f32[160,25], index: 1, kind: input, shape index: {}]   ;;  %s4680_s2 = inlined_call_operand.hbm [shape: f32[40,512], index: 2, kind: output, shape index: {}]  }
   0x1   :  { %9 = vsyncpa [#allocation4 + $0x1], 0  ;;  %s3801_s9 = smov 0   ;;  %s3803_s10 = smov 0  }
   0x2   :  { %s3805_s11 = smov 0   ;;  %s3807_s12 = smov 0  }
   0x3   :  { %s3809_s13 = smov 0   ;;  %s3811_s14 = smov 0  }
   0x4   :  { %s3813_s15 = smov 0   ;;  %s3815_s16 = smov 0  }
   0x5   :  { %s3817_s17 = smov 0   ;;  %s3819_s18 = smov 0  }
   0x6 LB: > { %s3006_s19 = sadd.s32 4294967295, %s3776_s18   ;;  %s3007_s20 = sadd.s32 4294967294, %s3776_s18   ;;  %s3776_s18 = sphi %s3819_s18, %s15_s18   ;;  %s3772_s17 = sphi %s3817_s17, %s4694_s17   ;;  %s3768_s16 = sphi %s3815_s16, %s4693_s16   ;;  %s3764_s15 = sphi %s3813_s15, %s4692_s15   ;;  %s3760_s14 = sphi %s3811_s14, %s4691_s14   ;;  %s3756_s13 = sphi %s3809_s13, %s4690_s13   ;;  %s3752_s12 = sphi %s3807_s12, %s4689_s12   ;;  %s3748_s11 = sphi %s3805_s11, %s4688_s11   ;;  %s3744_s10 = sphi %s3803_s10, %s4687_s10   ;;  %s3740_s9 = sphi %s3801_s9, %s4686_s9  }
   0x7   : > { %s24_s21 = sadd.s32 1, %s3768_s16  ;;  %s27_s22 = sadd.s32 1, %s3772_s17 }
   0x8   : > { %p25_p0 = scmp.ge.s32.totalorder %s24_s21, 2  ;;  %s36_s23 = sadd.s32 1, %s3756_s13 }
   0x9   : > { %p43_p1 = scmp.ne.s32.totalorder %s3756_s13, %s3752_s12  ;;  %p44_p2 = scmp.eq.s32.totalorder %s3776_s18, 0 }
   0xa   : > { %s4696_s21 = smov (%p25_p0, %s24_s21), 0  ;;  %s4698_s22 = smov (!%p25_p0, %s27_s22), %s3772_s17 }
   0xb   : > { %s31_s24 = ssub.s32 %s3768_s16, %s4696_s21  ;;  %p3864_p3 = por %p44_p2, %p43_p1 }
   0xc   : > { %p29_p4 = scmp.ge.s32.totalorder %s4698_s22, 2  ;;  %s83_s26 = sadd.s32 1, %s3748_s11 }
   0xd   : > { %p93_p5 = scmp.ne.s32.totalorder %s3748_s11, %s3744_s10  ;;  %p94_p6 = scmp.eq.s32.totalorder %s3006_s19, 3 }
   0xe   : > { %s4700_s22 = smov (%p29_p4, %s4698_s22), 0  ;;  %p99_p8 = scmp.ne.s32.totalorder %s3744_s10, %s3740_s9 }
   0xf   : > { %p3873_p7 = por %p94_p6, %p93_p5  ;;  %s32_s28 = ssub.s32 %s3772_s17, %s4700_s22 }
  0x10   : > { %p100_p9 = scmp.eq.s32.totalorder %s3007_s20, 3  ;;  %s33_s29 = sor.u32 %s32_s28, %s31_s24 }
  0x11   : > { %p81_p10 = scmp.eq.s32.totalorder %s32_s28, 0  ;;  %p34_p11 = scmp.eq.s32.totalorder %s33_s29, 0 }
  0x12   : > { %p3881_p12 = por %p100_p9, %p99_p8  ;;  %p3009_p13 = scmp.ge.s32.totalorder %s3776_s18, 4 }
  0x13   : > { %s3886_s3 = scalar_select %p81_p10, %s3748_s11, %s83_s26  }
  0x14   : > { %s3889_s4 = scalar_select %p34_p11, %s3756_s13, %s36_s23  }
  0x15   : > { %119 = sbr.rel (%p3009_p13) target bundleno = 37 (0x25), region = 20 }
  0x1c   : > { %122 = sbr.rel (!%p3864_p3) target bundleno = 37 (0x25), region = 24  ;;  %s124_s5 = sand.u32 (%p3864_p3), 1, %s3756_s13  }
  0x1d   : > { %s3012_s6 = sshll.u32 (%p3864_p3), %s3772_s17, 1  ;;  %s3010_s7 = sshll.u32 (%p3864_p3), %s124_s5, 5 }
  0x1e   : > { %s3137_s8 = sshll.u32 (%p3864_p3), %s3768_s16, 4  ;;  %s126_s28 = scalar_lea.vmem (%p3864_p3), [#allocation2], %s3010_s7 }
  0x1f   : > { %s130_s19 = sadd.s32 (%p3864_p3), %s3137_s8, %s3012_s6 }
  0x20   : > { %s3014_s20 = sshll.u32 (%p3864_p3), %s130_s19, 2 }
  0x21   : > { %s132_s23 = scalar_lea.vmem (%p3864_p3), %s4678_s0, %s3014_s20 }
  0x22   : > { %v166_v0 = vld [vmem:[%s132_s23] sm:$0xff] (%p3864_p3)  ;;  %v168_v1 = vld [vmem:[%s132_s23 + $0x10] sm:$0xff] (%p3864_p3) }
  0x23   : > { %v170_v2 = vld [vmem:[%s132_s23 + $0x20] sm:$0xff]  ;;  %167 = vst [vmem:[%s126_s28] sm:$0xff] %v166_v0  ;;  %169 = vst [vmem:[%s126_s28 + $0x8] sm:$0xff] %v168_v1  ;;  %v172_v3 = vld [vmem:[%s132_s23 + $0x30] sm:$0xff] }
  0x24   : > { %171 = vst [vmem:[%s126_s28 + $0x10] sm:$0xff] %v170_v2  ;;  %173 = vst [vmem:[%s126_s28 + $0x18] sm:$0xff] %v172_v3 }
  0x25 PF: > { %p3015_p0 = scmp.ge.s32.totalorder %s3776_s18, 1  ;;  %p178_p1 = scmp.lt.s32.totalorder %s3776_s18, 5 }
  0x27   : > { %p179_p2 = pnand %p3015_p0, %p178_p1 }
  0x28   : > { %s185_s25 = sand.u32 (!%p179_p2), 1, %s3752_s12   ;;  %s203_s29 = sand.u32 (!%p179_p2), 1, %s3744_s10  }
  0x29   : > { %182 = sbr.rel (%p179_p2) target bundleno = 4011 (0xfab), region = 62  ;;  %s3016_s5 = sshll.u32 (!%p179_p2), %s185_s25, 5 }
  0x2a   : > { %s3291_s6 = smul.u32 (!%p179_p2), 80, %s203_s29  ;;  %s3906_s7 = scalar_lea.vmem (!%p179_p2), [#allocation2], %s3016_s5 }
  0x2b   : > { %p3017_p3 = scmp.ne.s32.totalorder (!%p179_p2), %s3760_s14, 0 }
  0x2c   : > { %s3908_s8 = scalar_lea.vmem (!%p179_p2), [#allocation3], %s3291_s6 }
  0x30   : > { %212 = sbr.rel (%p3017_p3) target bundleno = 55 (0x37), region = 70  ;;  %v3778_v4 = vmov (!%p3017_p3), 0.0  }
  0x31   : > { %213 = vst [vmem:[%s3908_s8] sm:$0xff] (!%p3017_p3), %v3778_v4  ;;  %214 = vst [vmem:[%s3908_s8 + $0x8] sm:$0xff] (!%p3017_p3), %v3778_v4 }
  0x32   : > { %215 = vst [vmem:[%s3908_s8 + $0x10] sm:$0xff] (!%p3017_p3), %v3778_v4  ;;  %216 = vst [vmem:[%s3908_s8 + $0x18] sm:$0xff] (!%p3017_p3), %v3778_v4 }
  0x33   : > { %217 = vst [vmem:[%s3908_s8 + $0x20] sm:$0xff] (!%p3017_p3), %v3778_v4  ;;  %218 = vst [vmem:[%s3908_s8 + $0x28] sm:$0xff] (!%p3017_p3), %v3778_v4 }
  0x34   : > { %219 = vst [vmem:[%s3908_s8 + $0x30] sm:$0xff] (!%p3017_p3), %v3778_v4  ;;  %220 = vst [vmem:[%s3908_s8 + $0x38] sm:$0xff] (!%p3017_p3), %v3778_v4 }
  0x35   : > { %221 = vst [vmem:[%s3908_s8 + $0x40] sm:$0xff] (!%p3017_p3), %v3778_v4  ;;  %222 = vst [vmem:[%s3908_s8 + $0x48] sm:$0xff] (!%p3017_p3), %v3778_v4 }
  0x37 PF: > { %v253_v7 = vld [vmem:[%s3906_s7] sm:$0xff]  ;;  %vm269_vm0 = vcmask 1043456   ;;  %v3779_v13 = vmov 0.0   ;;  %vm298_vm1 = vcmask 1044480   ;;  %vm276_vm2 = vcmask 171008   ;;  %v3953_v25 = vld [vmem:[%s4679_s1 + $0x8] sm:$0xff] }
  0x38   : > { %v244_v5 = vld [vmem:[%s3908_s8 + $0x8] sm:$0xff]  ;;  %v255_v8 = vcombine.high %v253_v7, %v253_v7  ;;  %v243_v11 = vld [vmem:[%s3908_s8] sm:$0xff]  ;;  %369 = vmatprep.mubr.f32.mxu0 %v3779_v13  ;;  %713 = vmatprep.mubr.f32.mxu1 %v3779_v13  ;;  %vm552_vm3 = vcmask 1040384   ;;  %vm3780_vm4 = vmmov 1   ;;  %vm452_vm6 = vcmask 130048   ;;  %p2894_p4 = scmp.eq.s32.totalorder %s3760_s14, 1 }
  0x39   : > { %v3923_v6 = vld [vmem:[%s3908_s8 + $0x18] sm:$0xff]  ;;  %v260_v9 = vrot.slane %v244_v5, 4  ;;  %v3929_v12 = vld [vmem:[%s3908_s8 + $0x10] sm:$0xff]  ;;  %v259_v14 = vrot.slane %v243_v11, 4  ;;  %vm4008_vm5 = vmpackc.low %vm552_vm3, %vm3780_vm4  ;;  %vm548_vm7 = vcmask 72704   ;;  %vm627_vm8 = vcmask 203776  }
  0x3a   : > { %v266_v10 = vrot.slane %v3923_v6, 4  ;;  %v265_v15 = vrot.slane %v3929_v12, 4  ;;  %v3944_v24 = vld [vmem:[%s4679_s1] sm:$0xff]  ;;  %v3961_v26 = vld [vmem:[%s4679_s1 + $0x10] sm:$0xff]  ;;  %v3969_v27 = vld [vmem:[%s4679_s1 + $0x18] sm:$0xff]  ;;  %s3138_s14 = sshll.u32 %s3764_s15, 8 }
  0x3b   : > { %v271_v16 = vsel %vm269_vm0, %v255_v8, %v260_v9  ;;  %v270_v19 = vsel %vm269_vm0, %v253_v7, %v259_v14  ;;  %v3977_v28 = vld [vmem:[%s4679_s1 + $0x20] sm:$0xff]  ;;  %v3985_v29 = vld [vmem:[%s4679_s1 + $0x28] sm:$0xff]  ;;  %v3993_v30 = vld [vmem:[%s4679_s1 + $0x30] sm:$0xff]  ;;  %s2895_s25 = scalar_select %p2894_p4, 1, 0 }
  0x3c   : > { %v273_v17 = vsel %vm269_vm0, %v260_v9, %v266_v10  ;;  %v272_v20 = vsel %vm269_vm0, %v259_v14, %v265_v15  ;;  %v275_v22 = vsel %vm269_vm0, %v266_v10, 1.0  ;;  %v274_v23 = vsel %vm269_vm0, %v265_v15, 1.0  ;;  %v247_v55 = vld [vmem:[%s3908_s8 + $0x20] sm:$0xff]  ;;  %v248_v59 = vld [vmem:[%s3908_s8 + $0x28] sm:$0xff]  ;;  %s2924_s5 = sshll.u32 %s3908_s8, 4  ;;  %s4612_s12 = scalar_lea.hbm %s4680_s2, %s3138_s14  ;;  %s4614_s5 = int_to_ptr.vmem [resolvable:$true] %s2924_s5 }
  0x3d   : > { %v3139_v18 = vpack.c.bf16 %v273_v17, %v271_v16  ;;  %v3141_v21 = vpack.c.bf16 %v272_v20, %v270_v19  ;;  %s4620_s15 = scalar_lea.sflag [#allocation4], %s203_s29  ;;  %s3666_s19 = scalar_lea.vmem %s4614_s5, 1280 }
  0x3e   : > { %p3667_p5 = scmp.ne.s32.totalorder %s4614_s5, %s3666_s19  ;;  %s3782_s20 = smov [#allocation3]  }
  0x3f   : > { %3140 = vmatprep.subr.bf16.mxu0 %v3139_v18  ;;  %s3670_s24 = sshll.u32 %s3782_s20, 4  ;;  %s3671_s24 = int_to_ptr.vmem [resolvable:$false] %s3670_s24 }
  0x40   : > { %3142 = vmatpush1.bf16.msra.mxu0 %v3141_v21  ;;  %p3668_p6 = pnand %p3667_p5, %p3873_p7  ;;  %s3672_s26 = scalar_lea.vmem %s3671_s24, 2560 }
  0x41   : > { %3018 = vmatprep.subr.msk.mxu0 %vm298_vm1, %v275_v22  ;;  %p3673_p9 = scmp.lt.s32.totalorder %s4614_s5, %s3671_s24  ;;  %p3674_p10 = scmp.lt.s32.totalorder %s3672_s26, %s3666_s19 }
  0x42   : > { %p3669_p8 = pneg %p3668_p6 }
  0x43   : > { %p3675_p11 = por %p3674_p10, %p3673_p9 }
  0x44   : > { %3019 = vmatpush1.msk.msra.mxu0 %vm298_vm1, %v274_v23 }
  0x45   : > { %3020 = vmatmul.mubr.msk.f32.vlgmr.msra.gmra.mrb[0].mxu0 %vm276_vm2, %v3944_v24  ;;  %p3676_p13 = pnand %p3675_p11, %p3669_p8 }
  0x46   : > { %375 = vmatprep.mubr.f32.mxu0 %v3779_v13 }
  0x49   : > { %3021 = vmatmul.mubr.msk.f32.gmra.mrb[2].mxu0 %vm276_vm2, %v3953_v25 }
  0x4a   : > { %381 = vmatprep.mubr.f32.mxu0 %v3779_v13 }
  0x4d   : > { %3022 = vmatmul.mubr.msk.f32.gmra.mrb[4].mxu0 %vm276_vm2, %v3961_v26 }
  0x4e   : > { %387 = vmatprep.mubr.f32.mxu0 %v3779_v13 }
  0x51   : > { %3023 = vmatmul.mubr.msk.f32.gmra.mrb[6].mxu0 %vm276_vm2, %v3969_v27 }
  0x52   : > { %393 = vmatprep.mubr.f32.mxu0 %v3779_v13 }
  0x55   : > { %3024 = vmatmul.mubr.msk.f32.gmra.mrb[8].mxu0 %vm276_vm2, %v3977_v28 }
  0x56   : > { %399 = vmatprep.mubr.f32.mxu0 %v3779_v13 }
  0x59   : > { %3025 = vmatmul.mubr.msk.f32.gmra.mrb[10].mxu0 %vm276_vm2, %v3985_v29 }
  0x5a   : > { %405 = vmatprep.mubr.f32.mxu0 %v3779_v13 }
  0x5d   : > { %3026 = vmatmul.mubr.msk.f32.gmra.mrb[12].mxu0 %vm276_vm2, %v3993_v30 }
  0x5e   : > { %523 = vmatprep.mubr.f32.mxu0 %v3779_v13 }
 0x118   : > { %v371_v31 = vpop.f32.mrb[0].mxu0 }
 0x119   : > { %v373_v32 = vpop.f32.mrb[1].mxu0 }
 0x11c   : > { %v377_v33 = vpop.f32.mrb[2].mxu0 }
 0x11d   : > { %3390 = vtanh.f32 %v377_v33  ;;  %v379_v34 = vpop.f32.mrb[3].mxu0  ;;  %v3665_v33 = vld [vmem:[%s4679_s1 + $0x88] sm:$0xff] }
 0x11e   : > { %3392 = vtanh.f32 %v379_v34  ;;  %v3781_v34 = vmov 1.0  }
 0x11f   : > { %3394 = vtanh.f32 %v371_v31 }
 0x120   : > { %3396 = vtanh.f32 %v373_v32  ;;  %v383_v35 = vpop.f32.mrb[4].mxu0 }
 0x121   : > { %3398 = vtanh.f32 %v383_v35  ;;  %v385_v36 = vpop.f32.mrb[5].mxu0 }
 0x122   : > { %3400 = vtanh.f32 %v385_v36  ;;  %v4029_v36 = vld [vmem:[%s4679_s1 + $0x40] sm:$0xff] }
 0x124   : > { %v389_v37 = vpop.f32.mrb[6].mxu0 }
 0x125   : > { %v391_v38 = vpop.f32.mrb[7].mxu0 }
 0x127   : > { %v3391_v39 = vpop.eup %3390 }
 0x128   : > { %v3393_v40 = vpop.eup %3392  ;;  %v416_v41 = vmul.f32 0.5, %v3391_v39  ;;  %v395_v42 = vpop.f32.mrb[8].mxu0 }
 0x129   : > { %v3395_v43 = vpop.eup %3394  ;;  %v417_v44 = vmul.f32 0.5, %v3393_v40  ;;  %3402 = vtanh.f32 %v395_v42  ;;  %v397_v45 = vpop.f32.mrb[9].mxu0 }
 0x12a   : > { %v3397_v46 = vpop.eup %3396  ;;  %v418_v47 = vadd.f32 0.5, %v416_v41  ;;  %3404 = vtanh.f32 %v397_v45 }
 0x12b   : > { %v3399_v48 = vpop.eup %3398  ;;  %v419_v49 = vadd.f32 0.5, %v417_v44  ;;  %3406 = vtanh.f32 %v389_v37  ;;  %v4037_v37 = vld [vmem:[%s4679_s1 + $0x90] sm:$0xff] }
 0x12c   : > { %v3401_v50 = vpop.eup %3400  ;;  %v428_v51 = vmul.f32 %v3395_v43, %v418_v47  ;;  %v422_v52 = vmul.f32 0.5, %v3399_v48  ;;  %3408 = vtanh.f32 %v391_v38  ;;  %v401_v53 = vpop.f32.mrb[10].mxu0 }
 0x12d   : > { %v429_v54 = vmul.f32 %v3397_v46, %v419_v49  ;;  %v423_v56 = vmul.f32 0.5, %v3401_v50  ;;  %3410 = vtanh.f32 %v401_v53  ;;  %v403_v57 = vpop.f32.mrb[11].mxu0 }
 0x12e   : > { %v424_v58 = vadd.f32 0.5, %v422_v52  ;;  %3412 = vtanh.f32 %v403_v57  ;;  %v250_v52 = vld [vmem:[%s3908_s8 + $0x38] sm:$0xff] }
 0x12f   : > { %v425_v60 = vadd.f32 0.5, %v423_v56 }
 0x130   : > { %v426_v61 = vmul.f32 %v424_v58, %v247_v55  ;;  %v249_v55 = vld [vmem:[%s3908_s8 + $0x30] sm:$0xff] }
 0x131   : > { %v427_v62 = vmul.f32 %v425_v60, %v248_v59  ;;  %v4065_v60 = vld [vmem:[%s4679_s1 + $0x48] sm:$0xff] }
 0x132   : > { %v4000_v63 = vadd.f32 %v428_v51, %v426_v61  ;;  %v4073_v61 = vld [vmem:[%s4679_s1 + $0x50] sm:$0xff] }
 0x133   : > { %v3403_v0 = vpop.eup %3402  ;;  %v4002_v1 = vadd.f32 %v429_v54, %v427_v62  ;;  %v4081_v62 = vld [vmem:[%s4679_s1 + $0x58] sm:$0xff] }
 0x134   : > { %v3405_v2 = vpop.eup %3404  ;;  %v436_v3 = vmul.f32 0.5, %v3403_v0  ;;  %v4089_v0 = vld [vmem:[%s4679_s1 + $0x60] sm:$0xff] }
 0x135   : > { %v3407_v4 = vpop.eup %3406  ;;  %v437_v5 = vmul.f32 0.5, %v3405_v2  ;;  %v4097_v2 = vld [vmem:[%s4679_s1 + $0x68] sm:$0xff] }
 0x136   : > { %v3409_v7 = vpop.eup %3408  ;;  %v438_v8 = vadd.f32 0.5, %v436_v3  ;;  %v4105_v3 = vld [vmem:[%s4679_s1 + $0x70] sm:$0xff] }
 0x137   : > { %v3411_v9 = vpop.eup %3410  ;;  %v439_v10 = vadd.f32 0.5, %v437_v5 }
 0x138   : > { %v3413_v11 = vpop.eup %3412  ;;  %v448_v14 = vmul.f32 %v3407_v4, %v438_v8  ;;  %v442_v15 = vmul.f32 0.5, %v3411_v9 }
 0x139   : > { %v449_v16 = vmul.f32 %v3409_v7, %v439_v10  ;;  %v443_v17 = vmul.f32 0.5, %v3413_v11 }
 0x13a   : > { %v444_v18 = vadd.f32 0.5, %v442_v15 }
 0x13b   : > { %v445_v19 = vadd.f32 0.5, %v443_v17 }
 0x13c   : > { %v446_v20 = vmul.f32 %v444_v18, %v3929_v12 }
 0x13d   : > { %v447_v21 = vmul.f32 %v445_v19, %v3923_v6  ;;  %v4016_v6 = vld [vmem:[%s4679_s1 + $0x38] sm:$0xff] }
 0x13e   : > { %v450_v22 = vadd.f32 %v448_v14, %v446_v20 }
 0x13f   : > { %v451_v23 = vadd.f32 %v449_v16, %v447_v21 }
 0x140   : > { %v3145_v32 = vpack.c.bf16 %v450_v22, %v4000_v63  ;;  %v3150_v12 = vpack.c.bf16 %v3781_v34, %v450_v22 }
 0x141   : > { %v3143_v31 = vpack.c.bf16 %v451_v23, %v4002_v1  ;;  %v3147_v35 = vpack.c.bf16 %v3781_v34, %v451_v23 }
 0x143   : > { %3144 = vmatprep.subr.bf16.mxu0 %v3143_v31 }
 0x144   : > { %3146 = vmatpush1.bf16.msra.mxu0 %v3145_v32 }
 0x145   : > { %3149 = vmatprep.subr.msk.bf16.mxu0 %vm4008_vm5, %v3147_v35 }
 0x147   : > { %3027 = vmatmul.mubr.msk.f32.vlgmr.msra.gmra.mrb[12].mxu0 %vm452_vm6, %v4016_v6 }
 0x148   : > { %3152 = vmatpush1.bf16.msk.msra.mxu0 %vm4008_vm5, %v3150_v12  ;;  %529 = vmatprep.mubr.f32.mxu0 %v3779_v13 }
 0x14b   : > { %3028 = vmatmul.mubr.msk.f32.gmra.mrb[14].mxu0 %vm452_vm6, %v4029_v36 }
 0x14c   : > { %620 = vmatprep.mubr.f32.mxu0 %v3779_v13 }
 0x14f   : > { %3031 = vmatmul.mubr.msk.f32.vlgmr.msra.gmra.mrb[16].mxu0 %vm548_vm7, %v4037_v37 }
 0x150   : > { %958 = vmatprep.mubr.f32.mxu0 %v3779_v13 }
 0x21a   : > { %v525_v38 = vpop.f32.mrb[12].mxu0 }
 0x21b   : > { %3414 = vtanh.f32 %v525_v38  ;;  %v527_v39 = vpop.f32.mrb[13].mxu0 }
 0x21c   : > { %3416 = vtanh.f32 %v527_v39 }
 0x21e   : > { %v531_v40 = vpop.f32.mrb[14].mxu0 }
 0x21f   : > { %3418 = vtanh.f32 %v531_v40  ;;  %v533_v41 = vpop.f32.mrb[15].mxu0 }
 0x220   : > { %3420 = vtanh.f32 %v533_v41  ;;  %v251_v41 = vld [vmem:[%s3908_s8 + $0x40] sm:$0xff] }
 0x222   : > { %v4042_v42 = vpop.f32.mrb[16].mxu0 }
 0x223   : > { %v4044_v43 = vpop.f32.mrb[17].mxu0  ;;  %v3160_v59 = vpack.c.bf16 %v3781_v34, %v4042_v42 }
 0x224   : > { %v3157_v56 = vpack.c.bf16 %v3781_v34, %v4044_v43 }
 0x225   : > { %v3415_v44 = vpop.eup %3414 }
 0x226   : > { %v3417_v45 = vpop.eup %3416  ;;  %v540_v46 = vmul.f32 0.5, %v3415_v44 }
 0x227   : > { %v541_v47 = vmul.f32 0.5, %v3417_v45 }
 0x228   : > { %v542_v48 = vadd.f32 0.5, %v540_v46 }
 0x229   : > { %v3419_v49 = vpop.eup %3418  ;;  %v543_v50 = vadd.f32 0.5, %v541_v47  ;;  %v252_v47 = vld [vmem:[%s3908_s8 + $0x48] sm:$0xff] }
 0x22a   : > { %v3421_v51 = vpop.eup %3420  ;;  %v4047_v53 = vmul.f32 %v3419_v49, %v542_v48 }
 0x22b   : > { %v4049_v54 = vmul.f32 %v3421_v51, %v543_v50 }
 0x22c   : > { %v3155_v58 = vpack.c.bf16 %v249_v55, %v4047_v53 }
 0x22d   : > { %v3153_v57 = vpack.c.bf16 %v250_v52, %v4049_v54 }
 0x22f   : > { %3154 = vmatprep.subr.bf16.mxu1 %v3153_v57 }
 0x230   : > { %3156 = vmatpush1.bf16.msra.mxu1 %v3155_v58 }
 0x231   : > { %3159 = vmatprep.subr.msk.bf16.mxu1 %vm4008_vm5, %v3157_v56 }
 0x234   : > { %3162 = vmatpush1.bf16.msk.msra.mxu1 %vm4008_vm5, %v3160_v59 }
 0x237   : > { %3034 = vmatmul.mubr.msk.f32.vlgmr.msra.gmra.mrb[0].mxu1 %vm627_vm8, %v4065_v60 }
 0x238   : > { %719 = vmatprep.mubr.f32.mxu1 %v3779_v13 }
 0x23b   : > { %3035 = vmatmul.mubr.msk.f32.gmra.mrb[2].mxu1 %vm627_vm8, %v4073_v61 }
 0x23c   : > { %725 = vmatprep.mubr.f32.mxu1 %v3779_v13 }
 0x23f   : > { %3036 = vmatmul.mubr.msk.f32.gmra.mrb[4].mxu1 %vm627_vm8, %v4081_v62 }
 0x240   : > { %731 = vmatprep.mubr.f32.mxu1 %v3779_v13 }
 0x243   : > { %3037 = vmatmul.mubr.msk.f32.gmra.mrb[6].mxu1 %vm627_vm8, %v4089_v0 }
 0x244   : > { %737 = vmatprep.mubr.f32.mxu1 %v3779_v13 }
 0x247   : > { %3038 = vmatmul.mubr.msk.f32.gmra.mrb[8].mxu1 %vm627_vm8, %v4097_v2 }
 0x248   : > { %743 = vmatprep.mubr.f32.mxu1 %v3779_v13 }
 0x24b   : > { %3039 = vmatmul.mubr.msk.f32.gmra.mrb[10].mxu1 %vm627_vm8, %v4105_v3 }
 0x24c   : > { %749 = vmatprep.mubr.f32.mxu1 %v3779_v13 }
 0x30a   : > { %v715_v4 = vpop.f32.mrb[0].mxu1 }
 0x30b   : > { %v717_v5 = vpop.f32.mrb[1].mxu1 }
 0x30e   : > { %v721_v7 = vpop.f32.mrb[2].mxu1 }
 0x30f   : > { %3422 = vtanh.f32 %v721_v7  ;;  %v723_v8 = vpop.f32.mrb[3].mxu1 }
 0x310   : > { %3424 = vtanh.f32 %v723_v8 }
 0x311   : > { %3426 = vtanh.f32 %v715_v4 }
 0x312   : > { %3428 = vtanh.f32 %v717_v5  ;;  %v727_v9 = vpop.f32.mrb[4].mxu1 }
 0x313   : > { %3430 = vtanh.f32 %v727_v9  ;;  %v729_v10 = vpop.f32.mrb[5].mxu1 }
 0x314   : > { %3432 = vtanh.f32 %v729_v10 }
 0x316   : > { %v733_v11 = vpop.f32.mrb[6].mxu1 }
 0x317   : > { %v735_v14 = vpop.f32.mrb[7].mxu1 }
 0x319   : > { %v3423_v15 = vpop.eup %3422 }
 0x31a   : > { %v3425_v16 = vpop.eup %3424  ;;  %v760_v17 = vmul.f32 0.5, %v3423_v15  ;;  %v739_v18 = vpop.f32.mrb[8].mxu1 }
 0x31b   : > { %v3427_v19 = vpop.eup %3426  ;;  %v761_v20 = vmul.f32 0.5, %v3425_v16  ;;  %3434 = vtanh.f32 %v739_v18  ;;  %v741_v21 = vpop.f32.mrb[9].mxu1 }
 0x31c   : > { %v3429_v22 = vpop.eup %3428  ;;  %v762_v23 = vadd.f32 0.5, %v760_v17  ;;  %3436 = vtanh.f32 %v741_v21 }
 0x31d   : > { %v3431_v31 = vpop.eup %3430  ;;  %v763_v32 = vadd.f32 0.5, %v761_v20  ;;  %3438 = vtanh.f32 %v733_v11 }
 0x31e   : > { %v3433_v35 = vpop.eup %3432  ;;  %v772_v12 = vmul.f32 %v3427_v19, %v762_v23  ;;  %v766_v38 = vmul.f32 0.5, %v3431_v31  ;;  %3440 = vtanh.f32 %v735_v14  ;;  %v745_v39 = vpop.f32.mrb[10].mxu1 }
 0x31f   : > { %v773_v40 = vmul.f32 %v3429_v22, %v763_v32  ;;  %v767_v44 = vmul.f32 0.5, %v3433_v35  ;;  %3442 = vtanh.f32 %v745_v39  ;;  %v747_v45 = vpop.f32.mrb[11].mxu1  ;;  %v972_v35 = vrot.slane %v4047_v53, 4 }
 0x320   : > { %v768_v46 = vadd.f32 0.5, %v766_v38  ;;  %3444 = vtanh.f32 %v747_v45 }
 0x321   : > { %v769_v48 = vadd.f32 0.5, %v767_v44 }
 0x322   : > { %v770_v49 = vmul.f32 %v768_v46, %v251_v41 }
 0x323   : > { %v771_v50 = vmul.f32 %v769_v48, %v252_v47 }
 0x324   : > { %v4112_v51 = vadd.f32 %v772_v12, %v770_v49  ;;  %v973_v12 = vrot.slane %v4049_v54, 4 }
 0x325   : > { %v3435_v52 = vpop.eup %3434  ;;  %v4114_v55 = vadd.f32 %v773_v40, %v771_v50 }
 0x326   : > { %v3437_v56 = vpop.eup %3436  ;;  %v780_v57 = vmul.f32 0.5, %v3435_v52 }
 0x327   : > { %v3439_v58 = vpop.eup %3438  ;;  %v781_v59 = vmul.f32 0.5, %v3437_v56 }
 0x328   : > { %v3441_v4 = vpop.eup %3440  ;;  %v782_v5 = vadd.f32 0.5, %v780_v57 }
 0x329   : > { %v3443_v7 = vpop.eup %3442  ;;  %v783_v8 = vadd.f32 0.5, %v781_v59 }
 0x32a   : > { %v3445_v9 = vpop.eup %3444  ;;  %v792_v10 = vmul.f32 %v3439_v58, %v782_v5  ;;  %v786_v11 = vmul.f32 0.5, %v3443_v7 }
 0x32b   : > { %v793_v14 = vmul.f32 %v3441_v4, %v783_v8  ;;  %v787_v15 = vmul.f32 0.5, %v3445_v9 }
 0x32c   : > { %v788_v16 = vadd.f32 0.5, %v786_v11 }
 0x32d   : > { %v789_v17 = vadd.f32 0.5, %v787_v15 }
 0x32e   : > { %v790_v18 = vmul.f32 %v788_v16, %v4042_v42  ;;  %v4129_v42 = vld [vmem:[%s4679_s1 + $0x98] sm:$0xff] }
 0x32f   : > { %v791_v19 = vmul.f32 %v789_v17, %v4044_v43  ;;  %v3046_v43 = vld [vmem:[%s3906_s7 + $0x8] sm:$0xff] }
 0x330   : > { %v794_v20 = vadd.f32 %v792_v10, %v790_v18  ;;  %v968_v39 = vcombine.high %v3046_v43, %v3046_v43  ;;  %v982_v45 = vsel %vm269_vm0, %v3046_v43, %v972_v35 }
 0x331   : > { %v795_v21 = vadd.f32 %v793_v14, %v791_v19 }
 0x332   : > { %v3170_v31 = vpack.c.bf16 %v3781_v34, %v794_v20  ;;  %v3165_v32 = vpack.c.bf16 %v794_v20, %v4112_v51  ;;  %v983_v48 = vsel %vm269_vm0, %v968_v39, %v973_v12 }
 0x333   : > { %v3163_v22 = vpack.c.bf16 %v795_v21, %v4114_v55  ;;  %v3167_v23 = vpack.c.bf16 %v3781_v34, %v795_v21 }
 0x335   : > { %3164 = vmatprep.subr.bf16.mxu1 %v3163_v22  ;;  %3169 = vmatprep.subr.msk.bf16.mxu0 %vm4008_vm5, %v3167_v23 }
 0x336   : > { %3166 = vmatpush1.bf16.msra.mxu1 %v3165_v32  ;;  %3172 = vmatpush1.bf16.msk.msra.mxu0 %vm4008_vm5, %v3170_v31 }
 0x339   : > { %3045 = vmatmul.mubr.msk.f32.vlgmr.msra.gmra.mrb[18].mxu0 %vm548_vm7, %v4129_v42 }
 0x33a   : > { %1058 = vmatprep.mubr.f32.mxu0 %v3779_v13 }
 0x40c   : > { %v4137_v38 = vpop.f32.mrb[18].mxu0 }
 0x40d   : > { %v978_v40 = vrot.slane %v4137_v38, 4  ;;  %v4140_v41 = vpop.f32.mrb[19].mxu0 }
 0x40e   : > { %v979_v44 = vrot.slane %v4140_v41, 4 }
 0x40f   : > { %v984_v46 = vsel %vm269_vm0, %v972_v35, %v978_v40  ;;  %v986_v50 = vsel %vm269_vm0, %v978_v40, 1.0 }
 0x410   : > { %v3175_v47 = vpack.c.bf16 %v984_v46, %v982_v45  ;;  %v985_v53 = vsel %vm269_vm0, %v973_v12, %v979_v44  ;;  %v987_v54 = vsel %vm269_vm0, %v979_v44, 1.0 }
 0x411   : > { %v3173_v49 = vpack.c.bf16 %v985_v53, %v983_v48 }
 0x413   : > { %3174 = vmatprep.subr.bf16.mxu0 %v3173_v49 }
 0x414   : > { %3176 = vmatpush1.bf16.msra.mxu0 %v3175_v47 }
 0x415   : > { %3047 = vmatprep.subr.msk.mxu0 %vm298_vm1, %v987_v54 }
 0x418   : > { %3048 = vmatpush1.msk.msra.mxu0 %vm298_vm1, %v986_v50 }
 0x419   : > { %3049 = vmatmul.mubr.msk.f32.vlgmr.msra.gmra.mrb[20].mxu0 %vm276_vm2, %v3944_v24  ;;  %v4175_v24 = vld [vmem:[%s4679_s1 + $0x78] sm:$0xff] }
 0x41a   : > { %1064 = vmatprep.mubr.f32.mxu0 %v3779_v13  ;;  %3040 = vmatmul.mubr.msk.f32.gmra.mrb[12].mxu1 %vm627_vm8, %v4175_v24 }
 0x41b   : > { %866 = vmatprep.mubr.f32.mxu1 %v3779_v13 }
 0x41d   : > { %3050 = vmatmul.mubr.msk.f32.gmra.mrb[22].mxu0 %vm276_vm2, %v3953_v25  ;;  %v4183_v25 = vld [vmem:[%s4679_s1 + $0x80] sm:$0xff] }
 0x41e   : > { %1070 = vmatprep.mubr.f32.mxu0 %v3779_v13 }
 0x421   : > { %3051 = vmatmul.mubr.msk.f32.gmra.mrb[24].mxu0 %vm276_vm2, %v3961_v26  ;;  %v4191_v26 = vld [vmem:[%s4679_s1 + $0x88] sm:$0xff] }
 0x422   : > { %1076 = vmatprep.mubr.f32.mxu0 %v3779_v13  ;;  %3041 = vmatmul.mubr.msk.f32.vlgmr.msra.gmra.mrb[12].mxu1 %vm452_vm6, %v4183_v25 }
 0x423   : > { %872 = vmatprep.mubr.f32.mxu1 %v3779_v13 }
 0x425   : > { %3052 = vmatmul.mubr.msk.f32.gmra.mrb[26].mxu0 %vm276_vm2, %v3969_v27 }
 0x426   : > { %1082 = vmatprep.mubr.f32.mxu0 %v3779_v13  ;;  %3042 = vmatmul.mubr.msk.f32.gmra.mrb[14].mxu1 %vm452_vm6, %v4191_v26 }
 0x427   : > { %1294 = vmatprep.mubr.f32.mxu1 %v3779_v13 }
 0x429   : > { %3053 = vmatmul.mubr.msk.f32.gmra.mrb[28].mxu0 %vm276_vm2, %v3977_v28 }
 0x42a   : > { %1088 = vmatprep.mubr.f32.mxu0 %v3779_v13 }
 0x42d   : > { %3054 = vmatmul.mubr.msk.f32.gmra.mrb[30].mxu0 %vm276_vm2, %v3985_v29 }
 0x42e   : > { %1094 = vmatprep.mubr.f32.mxu0 %v3779_v13 }
 0x431   : > { %3055 = vmatmul.mubr.msk.f32.gmra.mrb[32].mxu0 %vm276_vm2, %v3993_v30 }
 0x432   : > { %1205 = vmatprep.mubr.f32.mxu0 %v3779_v13 }
 0x4ec   : > { %v1060_v27 = vpop.f32.mrb[20].mxu0 }
 0x4ed   : > { %v1062_v52 = vpop.f32.mrb[21].mxu0 }
 0x4f0   : > { %v1066_v56 = vpop.f32.mrb[22].mxu0 }
 0x4f1   : > { %3446 = vtanh.f32 %v1066_v56  ;;  %v1068_v57 = vpop.f32.mrb[23].mxu0 }
 0x4f2   : > { %3448 = vtanh.f32 %v1068_v57 }
 0x4f3   : > { %3450 = vtanh.f32 %v1060_v27 }
 0x4f4   : > { %3452 = vtanh.f32 %v1062_v52  ;;  %v1072_v58 = vpop.f32.mrb[24].mxu0 }
 0x4f5   : > { %3454 = vtanh.f32 %v1072_v58  ;;  %v1074_v59 = vpop.f32.mrb[25].mxu0 }
 0x4f6   : > { %3456 = vtanh.f32 %v1074_v59 }
 0x4f8   : > { %v1078_v4 = vpop.f32.mrb[26].mxu0 }
 0x4f9   : > { %v1080_v5 = vpop.f32.mrb[27].mxu0 }
 0x4fb   : > { %v3447_v7 = vpop.eup %3446 }
 0x4fc   : > { %v3449_v8 = vpop.eup %3448  ;;  %v1105_v9 = vmul.f32 0.5, %v3447_v7  ;;  %v1084_v10 = vpop.f32.mrb[28].mxu0 }
 0x4fd   : > { %v3451_v11 = vpop.eup %3450  ;;  %v1106_v14 = vmul.f32 0.5, %v3449_v8  ;;  %3458 = vtanh.f32 %v1084_v10  ;;  %v1086_v15 = vpop.f32.mrb[29].mxu0 }
 0x4fe   : > { %v3453_v16 = vpop.eup %3452  ;;  %v1107_v17 = vadd.f32 0.5, %v1105_v9  ;;  %3460 = vtanh.f32 %v1086_v15 }
 0x4ff   : > { %v3455_v18 = vpop.eup %3454  ;;  %v1108_v19 = vadd.f32 0.5, %v1106_v14  ;;  %3462 = vtanh.f32 %v1078_v4 }
 0x500   : > { %v3457_v20 = vpop.eup %3456  ;;  %v1117_v21 = vmul.f32 %v3451_v11, %v1107_v17  ;;  %v1111_v22 = vmul.f32 0.5, %v3455_v18  ;;  %3464 = vtanh.f32 %v1080_v5  ;;  %v1090_v23 = vpop.f32.mrb[30].mxu0 }
 0x501   : > { %v1118_v31 = vmul.f32 %v3453_v16, %v1108_v19  ;;  %v1112_v32 = vmul.f32 0.5, %v3457_v20  ;;  %3466 = vtanh.f32 %v1090_v23  ;;  %v1092_v43 = vpop.f32.mrb[31].mxu0 }
 0x502   : > { %v1113_v35 = vadd.f32 0.5, %v1111_v22  ;;  %3468 = vtanh.f32 %v1092_v43 }
 0x503   : > { %v1114_v12 = vadd.f32 0.5, %v1112_v32 }
 0x504   : > { %v1115_v39 = vmul.f32 %v1113_v35, %v4000_v63 }
 0x505   : > { %v1116_v40 = vmul.f32 %v1114_v12, %v4002_v1 }
 0x506   : > { %v4198_v44 = vadd.f32 %v1117_v21, %v1115_v39 }
 0x507   : > { %v3459_v45 = vpop.eup %3458  ;;  %v4200_v46 = vadd.f32 %v1118_v31, %v1116_v40 }
 0x508   : > { %v3461_v47 = vpop.eup %3460  ;;  %v1125_v48 = vmul.f32 0.5, %v3459_v45 }
 0x509   : > { %v3463_v53 = vpop.eup %3462  ;;  %v1126_v49 = vmul.f32 0.5, %v3461_v47 }
 0x50a   : > { %v3465_v54 = vpop.eup %3464  ;;  %v1127_v50 = vadd.f32 0.5, %v1125_v48 }
 0x50b   : > { %v3467_v27 = vpop.eup %3466  ;;  %v1128_v52 = vadd.f32 0.5, %v1126_v49 }
 0x50c   : > { %v3469_v56 = vpop.eup %3468  ;;  %v1137_v57 = vmul.f32 %v3463_v53, %v1127_v50  ;;  %v1131_v58 = vmul.f32 0.5, %v3467_v27 }
 0x50d   : > { %v1138_v59 = vmul.f32 %v3465_v54, %v1128_v52  ;;  %v1132_v63 = vmul.f32 0.5, %v3469_v56 }
 0x50e   : > { %v1133_v4 = vadd.f32 0.5, %v1131_v58 }
 0x50f   : > { %v1134_v1 = vadd.f32 0.5, %v1132_v63 }
 0x510   : > { %v1135_v5 = vmul.f32 %v1133_v4, %v4137_v38  ;;  %v868_v38 = vpop.f32.mrb[12].mxu1 }
 0x511   : > { %v1136_v7 = vmul.f32 %v1134_v1, %v4140_v41  ;;  %3470 = vtanh.f32 %v868_v38  ;;  %v870_v41 = vpop.f32.mrb[13].mxu1 }
 0x512   : > { %v1139_v8 = vadd.f32 %v1137_v57, %v1135_v5  ;;  %3472 = vtanh.f32 %v870_v41  ;;  %v874_v16 = vpop.f32.mrb[14].mxu1 }
 0x513   : > { %v1140_v9 = vadd.f32 %v1138_v59, %v1136_v7  ;;  %3474 = vtanh.f32 %v874_v16  ;;  %v876_v17 = vpop.f32.mrb[15].mxu1 }
 0x514   : > { %v3184_v14 = vpack.c.bf16 %v3781_v34, %v1139_v8  ;;  %v3179_v15 = vpack.c.bf16 %v1139_v8, %v4198_v44  ;;  %3476 = vtanh.f32 %v876_v17 }
 0x515   : > { %v3177_v10 = vpack.c.bf16 %v1140_v9, %v4200_v46  ;;  %v3181_v11 = vpack.c.bf16 %v3781_v34, %v1140_v9 }
 0x517   : > { %3178 = vmatprep.subr.bf16.mxu0 %v3177_v10  ;;  %3183 = vmatprep.subr.msk.bf16.mxu1 %vm4008_vm5, %v3181_v11 }
 0x518   : > { %3180 = vmatpush1.bf16.msra.mxu0 %v3179_v15  ;;  %3186 = vmatpush1.bf16.msk.msra.mxu1 %vm4008_vm5, %v3184_v14 }
 0x51b   : > { %3056 = vmatmul.mubr.msk.f32.vlgmr.msra.gmra.mrb[32].mxu0 %vm452_vm6, %v4016_v6  ;;  %3060 = vmatmul.mubr.msk.f32.vlgmr.msra.gmra.mrb[16].mxu1 %vm548_vm7, %v4037_v37  ;;  %v3471_v18 = vpop.eup %3470 }
 0x51c   : > { %1211 = vmatprep.mubr.f32.mxu0 %v3779_v13  ;;  %1365 = vmatprep.mubr.f32.mxu1 %v3779_v13  ;;  %v3473_v19 = vpop.eup %3472  ;;  %v883_v20 = vmul.f32 0.5, %v3471_v18 }
 0x51d   : > { %v884_v21 = vmul.f32 0.5, %v3473_v19  ;;  %v3475_v23 = vpop.eup %3474 }
 0x51e   : > { %v885_v22 = vadd.f32 0.5, %v883_v20  ;;  %v3477_v32 = vpop.eup %3476 }
 0x51f   : > { %3057 = vmatmul.mubr.msk.f32.gmra.mrb[34].mxu0 %vm452_vm6, %v4029_v36  ;;  %v886_v31 = vadd.f32 0.5, %v884_v21 }
 0x520   : > { %1601 = vmatprep.mubr.f32.mxu0 %v3779_v13  ;;  %v889_v35 = vmul.f32 %v3475_v23, %v885_v22 }
 0x521   : > { %v890_v43 = vmul.f32 %v3477_v32, %v886_v31 }
 0x5ee   : > { %v1207_v12 = vpop.f32.mrb[32].mxu0  ;;  %v4221_v39 = vpop.f32.mrb[16].mxu1 }
 0x5ef   : > { %3478 = vtanh.f32 %v1207_v12  ;;  %v1209_v40 = vpop.f32.mrb[33].mxu0  ;;  %v4223_v45 = vpop.f32.mrb[17].mxu1  ;;  %v3194_v5 = vpack.c.bf16 %v3781_v34, %v4221_v39 }
 0x5f0   : > { %3480 = vtanh.f32 %v1209_v40  ;;  %v3191_v4 = vpack.c.bf16 %v3781_v34, %v4223_v45 }
 0x5f2   : > { %v1213_v47 = vpop.f32.mrb[34].mxu0 }
 0x5f3   : > { %3482 = vtanh.f32 %v1213_v47  ;;  %v1215_v48 = vpop.f32.mrb[35].mxu0 }
 0x5f4   : > { %3484 = vtanh.f32 %v1215_v48 }
 0x5f9   : > { %v3479_v53 = vpop.eup %3478 }
 0x5fa   : > { %v3481_v49 = vpop.eup %3480  ;;  %v1222_v54 = vmul.f32 0.5, %v3479_v53 }
 0x5fb   : > { %v1223_v50 = vmul.f32 0.5, %v3481_v49 }
 0x5fc   : > { %v1224_v27 = vadd.f32 0.5, %v1222_v54 }
 0x5fd   : > { %v3483_v52 = vpop.eup %3482  ;;  %v1225_v56 = vadd.f32 0.5, %v1223_v50 }
 0x5fe   : > { %v3485_v57 = vpop.eup %3484  ;;  %v4225_v58 = vmul.f32 %v3483_v52, %v1224_v27 }
 0x5ff   : > { %v4227_v59 = vmul.f32 %v3485_v57, %v1225_v56 }
 0x600   : > { %v3189_v63 = vpack.c.bf16 %v889_v35, %v4225_v58 }
 0x601   : > { %v3187_v1 = vpack.c.bf16 %v890_v43, %v4227_v59 }
 0x603   : > { %3188 = vmatprep.subr.bf16.mxu1 %v3187_v1 }
 0x604   : > { %3190 = vmatpush1.bf16.msra.mxu1 %v3189_v63 }
 0x605   : > { %3193 = vmatprep.subr.msk.bf16.mxu1 %vm4008_vm5, %v3191_v4 }
 0x608   : > { %3196 = vmatpush1.bf16.msk.msra.mxu1 %vm4008_vm5, %v3194_v5 }
 0x60b   : > { %3063 = vmatmul.mubr.msk.f32.vlgmr.msra.gmra.mrb[18].mxu1 %vm627_vm8, %v4065_v60 }
 0x60c   : > { %1371 = vmatprep.mubr.f32.mxu1 %v3779_v13 }
 0x60f   : > { %3064 = vmatmul.mubr.msk.f32.gmra.mrb[20].mxu1 %vm627_vm8, %v4073_v61 }
 0x610   : > { %1377 = vmatprep.mubr.f32.mxu1 %v3779_v13 }
 0x613   : > { %3065 = vmatmul.mubr.msk.f32.gmra.mrb[22].mxu1 %vm627_vm8, %v4081_v62 }
 0x614   : > { %1383 = vmatprep.mubr.f32.mxu1 %v3779_v13 }
 0x617   : > { %3066 = vmatmul.mubr.msk.f32.gmra.mrb[24].mxu1 %vm627_vm8, %v4089_v0 }
 0x618   : > { %1389 = vmatprep.mubr.f32.mxu1 %v3779_v13 }
 0x61b   : > { %3067 = vmatmul.mubr.msk.f32.gmra.mrb[26].mxu1 %vm627_vm8, %v4097_v2 }
 0x61c   : > { %1395 = vmatprep.mubr.f32.mxu1 %v3779_v13 }
 0x61f   : > { %3068 = vmatmul.mubr.msk.f32.gmra.mrb[28].mxu1 %vm627_vm8, %v4105_v3 }
 0x620   : > { %1401 = vmatprep.mubr.f32.mxu1 %v3779_v13 }
 0x623   : > { %3069 = vmatmul.mubr.msk.f32.gmra.mrb[30].mxu1 %vm627_vm8, %v4175_v24 }
 0x624   : > { %1512 = vmatprep.mubr.f32.mxu1 %v3779_v13 }
 0x6de   : > { %v1367_v60 = vpop.f32.mrb[18].mxu1 }
 0x6df   : > { %v1369_v7 = vpop.f32.mrb[19].mxu1 }
 0x6e2   : > { %v1373_v8 = vpop.f32.mrb[20].mxu1 }
 0x6e3   : > { %3486 = vtanh.f32 %v1373_v8  ;;  %v1375_v9 = vpop.f32.mrb[21].mxu1 }
 0x6e4   : > { %3488 = vtanh.f32 %v1375_v9 }
 0x6e5   : > { %3490 = vtanh.f32 %v1367_v60 }
 0x6e6   : > { %3492 = vtanh.f32 %v1369_v7  ;;  %v1379_v10 = vpop.f32.mrb[22].mxu1 }
 0x6e7   : > { %3494 = vtanh.f32 %v1379_v10  ;;  %v1381_v11 = vpop.f32.mrb[23].mxu1 }
 0x6e8   : > { %3496 = vtanh.f32 %v1381_v11 }
 0x6ea   : > { %v1385_v14 = vpop.f32.mrb[24].mxu1 }
 0x6eb   : > { %v1387_v15 = vpop.f32.mrb[25].mxu1 }
 0x6ed   : > { %v3487_v38 = vpop.eup %3486 }
 0x6ee   : > { %v3489_v41 = vpop.eup %3488  ;;  %v1412_v16 = vmul.f32 0.5, %v3487_v38  ;;  %v1391_v17 = vpop.f32.mrb[26].mxu1 }
 0x6ef   : > { %v3491_v18 = vpop.eup %3490  ;;  %v1413_v19 = vmul.f32 0.5, %v3489_v41  ;;  %3498 = vtanh.f32 %v1391_v17  ;;  %v1393_v20 = vpop.f32.mrb[27].mxu1 }
 0x6f0   : > { %v3493_v21 = vpop.eup %3492  ;;  %v1414_v22 = vadd.f32 0.5, %v1412_v16  ;;  %3500 = vtanh.f32 %v1393_v20 }
 0x6f1   : > { %v3495_v23 = vpop.eup %3494  ;;  %v1415_v31 = vadd.f32 0.5, %v1413_v19  ;;  %3502 = vtanh.f32 %v1385_v14 }
 0x6f2   : > { %v3497_v32 = vpop.eup %3496  ;;  %v1424_v43 = vmul.f32 %v3491_v18, %v1414_v22  ;;  %v1418_v35 = vmul.f32 0.5, %v3495_v23  ;;  %3504 = vtanh.f32 %v1387_v15  ;;  %v1397_v12 = vpop.f32.mrb[28].mxu1  ;;  %v1616_v22 = vrot.slane %v4227_v59, 4 }
 0x6f3   : > { %v1425_v40 = vmul.f32 %v3493_v21, %v1415_v31  ;;  %v1419_v47 = vmul.f32 0.5, %v3497_v32  ;;  %3506 = vtanh.f32 %v1397_v12  ;;  %v1399_v48 = vpop.f32.mrb[29].mxu1 }
 0x6f4   : > { %v1420_v53 = vadd.f32 0.5, %v1418_v35  ;;  %3508 = vtanh.f32 %v1399_v48 }
 0x6f5   : > { %v1421_v49 = vadd.f32 0.5, %v1419_v47 }
 0x6f6   : > { %v1422_v54 = vmul.f32 %v1420_v53, %v4112_v51 }
 0x6f7   : > { %v1423_v50 = vmul.f32 %v1421_v49, %v4114_v55 }
 0x6f8   : > { %v4262_v27 = vadd.f32 %v1424_v43, %v1422_v54  ;;  %v4305_v54 = vld [vmem:[%s4679_s1] sm:$0xff] }
 0x6f9   : > { %v3499_v52 = vpop.eup %3498  ;;  %v4264_v56 = vadd.f32 %v1425_v40, %v1423_v50  ;;  %v4313_v50 = vld [vmem:[%s4679_s1 + $0x8] sm:$0xff] }
 0x6fa   : > { %v3501_v57 = vpop.eup %3500  ;;  %v1432_v63 = vmul.f32 0.5, %v3499_v52  ;;  %v4321_v52 = vld [vmem:[%s4679_s1 + $0x10] sm:$0xff] }
 0x6fb   : > { %v3503_v4 = vpop.eup %3502  ;;  %v1433_v1 = vmul.f32 0.5, %v3501_v57  ;;  %v4329_v57 = vld [vmem:[%s4679_s1 + $0x18] sm:$0xff] }
 0x6fc   : > { %v3505_v5 = vpop.eup %3504  ;;  %v1434_v60 = vadd.f32 0.5, %v1432_v63 }
 0x6fd   : > { %v3507_v7 = vpop.eup %3506  ;;  %v1435_v8 = vadd.f32 0.5, %v1433_v1 }
 0x6fe   : > { %v3509_v9 = vpop.eup %3508  ;;  %v1444_v10 = vmul.f32 %v3503_v4, %v1434_v60  ;;  %v1438_v11 = vmul.f32 0.5, %v3507_v7 }
 0x6ff   : > { %v1445_v14 = vmul.f32 %v3505_v5, %v1435_v8  ;;  %v1439_v51 = vmul.f32 0.5, %v3509_v9 }
 0x700   : > { %v1440_v15 = vadd.f32 0.5, %v1438_v11 }
 0x701   : > { %v1441_v55 = vadd.f32 0.5, %v1439_v51 }
 0x702   : > { %v1442_v38 = vmul.f32 %v1440_v15, %v4221_v39  ;;  %v3075_v39 = vld [vmem:[%s3906_s7 + $0x10] sm:$0xff] }
 0x703   : > { %v1443_v41 = vmul.f32 %v1441_v55, %v4223_v45  ;;  %v1615_v45 = vrot.slane %v4225_v58, 4  ;;  %v1611_v31 = vcombine.high %v3075_v39, %v3075_v39 }
 0x704   : > { %v1446_v16 = vadd.f32 %v1444_v10, %v1442_v38 }
 0x705   : > { %v1447_v17 = vadd.f32 %v1445_v14, %v1443_v41  ;;  %v1625_v12 = vsel %vm269_vm0, %v3075_v39, %v1615_v45  ;;  %v1626_v48 = vsel %vm269_vm0, %v1611_v31, %v1616_v22 }
 0x706   : > { %v3204_v20 = vpack.c.bf16 %v3781_v34, %v1446_v16  ;;  %v3199_v21 = vpack.c.bf16 %v1446_v16, %v4262_v27 }
 0x707   : > { %v3197_v18 = vpack.c.bf16 %v1447_v17, %v4264_v56  ;;  %v3201_v19 = vpack.c.bf16 %v3781_v34, %v1447_v17 }
 0x709   : > { %3198 = vmatprep.subr.bf16.mxu1 %v3197_v18  ;;  %3203 = vmatprep.subr.msk.bf16.mxu0 %vm4008_vm5, %v3201_v19 }
 0x70a   : > { %3200 = vmatpush1.bf16.msra.mxu1 %v3199_v21  ;;  %3206 = vmatpush1.bf16.msk.msra.mxu0 %vm4008_vm5, %v3204_v20 }
 0x70d   : > { %3074 = vmatmul.mubr.msk.f32.vlgmr.msra.gmra.mrb[36].mxu0 %vm548_vm7, %v4129_v42  ;;  %3070 = vmatmul.mubr.msk.f32.vlgmr.msra.gmra.mrb[30].mxu1 %vm452_vm6, %v4183_v25 }
 0x70e   : > { %1701 = vmatprep.mubr.f32.mxu0 %v3779_v13  ;;  %1518 = vmatprep.mubr.f32.mxu1 %v3779_v13 }
 0x711   : > { %3071 = vmatmul.mubr.msk.f32.gmra.mrb[32].mxu1 %vm452_vm6, %v4191_v26 }
 0x712   : > { %1937 = vmatprep.mubr.f32.mxu1 %v3779_v13 }
 0x7e0   : > { %v4288_v23 = vpop.f32.mrb[36].mxu0  ;;  %v4343_v63 = vpop.f32.mrb[30].mxu1 }
 0x7e1   : > { %v1621_v32 = vrot.slane %v4288_v23, 4  ;;  %v4291_v43 = vpop.f32.mrb[37].mxu0  ;;  %v4345_v4 = vpop.f32.mrb[31].mxu1 }
 0x7e2   : > { %v1622_v35 = vrot.slane %v4291_v43, 4 }
 0x7e3   : > { %v1627_v40 = vsel %vm269_vm0, %v1615_v45, %v1621_v32  ;;  %v1629_v49 = vsel %vm269_vm0, %v1621_v32, 1.0 }
 0x7e4   : > { %v3209_v47 = vpack.c.bf16 %v1627_v40, %v1625_v12  ;;  %v1628_v58 = vsel %vm269_vm0, %v1616_v22, %v1622_v35  ;;  %v1630_v59 = vsel %vm269_vm0, %v1622_v35, 1.0  ;;  %v4347_v1 = vpop.f32.mrb[32].mxu1 }
 0x7e5   : > { %v3207_v53 = vpack.c.bf16 %v1628_v58, %v1626_v48  ;;  %v4349_v5 = vpop.f32.mrb[33].mxu1 }
 0x7e7   : > { %3208 = vmatprep.subr.bf16.mxu0 %v3207_v53 }
 0x7e8   : > { %3210 = vmatpush1.bf16.msra.mxu0 %v3209_v47 }
 0x7e9   : > { %3076 = vmatprep.subr.msk.mxu0 %vm298_vm1, %v1630_v59 }
 0x7ec   : > { %3077 = vmatpush1.msk.msra.mxu0 %vm298_vm1, %v1629_v49 }
 0x7ed   : > { %3078 = vmatmul.mubr.msk.f32.vlgmr.msra.gmra.mrb[38].mxu0 %vm276_vm2, %v4305_v54 }
 0x7ee   : > { %1707 = vmatprep.mubr.f32.mxu0 %v3779_v13 }
 0x7f1   : > { %3079 = vmatmul.mubr.msk.f32.gmra.mrb[40].mxu0 %vm276_vm2, %v4313_v50 }
 0x7f2   : > { %1713 = vmatprep.mubr.f32.mxu0 %v3779_v13 }
 0x7f5   : > { %3080 = vmatmul.mubr.msk.f32.gmra.mrb[42].mxu0 %vm276_vm2, %v4321_v52 }
 0x7f6   : > { %1719 = vmatprep.mubr.f32.mxu0 %v3779_v13 }
 0x7f9   : > { %3081 = vmatmul.mubr.msk.f32.gmra.mrb[44].mxu0 %vm276_vm2, %v4329_v57 }
 0x7fa   : > { %1725 = vmatprep.mubr.f32.mxu0 %v3779_v13 }
 0x7fd   : > { %3082 = vmatmul.mubr.msk.f32.gmra.mrb[46].mxu0 %vm276_vm2, %v3977_v28 }
 0x7fe   : > { %1731 = vmatprep.mubr.f32.mxu0 %v3779_v13 }
 0x801   : > { %3083 = vmatmul.mubr.msk.f32.gmra.mrb[48].mxu0 %vm276_vm2, %v3985_v29 }
 0x802   : > { %1737 = vmatprep.mubr.f32.mxu0 %v3779_v13 }
 0x805   : > { %3084 = vmatmul.mubr.msk.f32.gmra.mrb[50].mxu0 %vm276_vm2, %v3993_v30 }
 0x806   : > { %1848 = vmatprep.mubr.f32.mxu0 %v3779_v13 }
 0x8c0   : > { %v1703_v28 = vpop.f32.mrb[38].mxu0 }
 0x8c1   : > { %v1705_v60 = vpop.f32.mrb[39].mxu0 }
 0x8c4   : > { %v1709_v7 = vpop.f32.mrb[40].mxu0 }
 0x8c5   : > { %3510 = vtanh.f32 %v1709_v7  ;;  %v1711_v29 = vpop.f32.mrb[41].mxu0 }
 0x8c6   : > { %3512 = vtanh.f32 %v1711_v29 }
 0x8c7   : > { %3514 = vtanh.f32 %v1703_v28 }
 0x8c8   : > { %3516 = vtanh.f32 %v1705_v60  ;;  %v1715_v8 = vpop.f32.mrb[42].mxu0 }
 0x8c9   : > { %3518 = vtanh.f32 %v1715_v8  ;;  %v1717_v30 = vpop.f32.mrb[43].mxu0 }
 0x8ca   : > { %3520 = vtanh.f32 %v1717_v30 }
 0x8cc   : > { %v1721_v9 = vpop.f32.mrb[44].mxu0 }
 0x8cd   : > { %v1723_v10 = vpop.f32.mrb[45].mxu0 }
 0x8cf   : > { %v3511_v11 = vpop.eup %3510 }
 0x8d0   : > { %v3513_v14 = vpop.eup %3512  ;;  %v1748_v51 = vmul.f32 0.5, %v3511_v11  ;;  %v1727_v15 = vpop.f32.mrb[46].mxu0 }
 0x8d1   : > { %v3515_v55 = vpop.eup %3514  ;;  %v1749_v38 = vmul.f32 0.5, %v3513_v14  ;;  %3522 = vtanh.f32 %v1727_v15  ;;  %v1729_v41 = vpop.f32.mrb[47].mxu0 }
 0x8d2   : > { %v3517_v16 = vpop.eup %3516  ;;  %v1750_v17 = vadd.f32 0.5, %v1748_v51  ;;  %3524 = vtanh.f32 %v1729_v41 }
 0x8d3   : > { %v3519_v18 = vpop.eup %3518  ;;  %v1751_v19 = vadd.f32 0.5, %v1749_v38  ;;  %3526 = vtanh.f32 %v1721_v9 }
 0x8d4   : > { %v3521_v20 = vpop.eup %3520  ;;  %v1760_v21 = vmul.f32 %v3515_v55, %v1750_v17  ;;  %v1754_v39 = vmul.f32 0.5, %v3519_v18  ;;  %3528 = vtanh.f32 %v1723_v10  ;;  %v1733_v45 = vpop.f32.mrb[48].mxu0 }
 0x8d5   : > { %v1761_v22 = vmul.f32 %v3517_v16, %v1751_v19  ;;  %v1755_v31 = vmul.f32 0.5, %v3521_v20  ;;  %3530 = vtanh.f32 %v1733_v45  ;;  %v1735_v32 = vpop.f32.mrb[49].mxu0 }
 0x8d6   : > { %v1756_v35 = vadd.f32 0.5, %v1754_v39  ;;  %3532 = vtanh.f32 %v1735_v32 }
 0x8d7   : > { %v1757_v12 = vadd.f32 0.5, %v1755_v31  ;;  %3534 = vtanh.f32 %v4343_v63 }
 0x8d8   : > { %v1758_v40 = vmul.f32 %v1756_v35, %v4198_v44  ;;  %3536 = vtanh.f32 %v4345_v4 }
 0x8d9   : > { %v1759_v47 = vmul.f32 %v1757_v12, %v4200_v46  ;;  %3538 = vtanh.f32 %v4347_v1 }
 0x8da   : > { %v4353_v48 = vadd.f32 %v1760_v21, %v1758_v40  ;;  %3540 = vtanh.f32 %v4349_v5 }
 0x8db   : > { %v3523_v58 = vpop.eup %3522  ;;  %v4355_v53 = vadd.f32 %v1761_v22, %v1759_v47 }
 0x8dc   : > { %v3525_v59 = vpop.eup %3524  ;;  %v1768_v49 = vmul.f32 0.5, %v3523_v58 }
 0x8dd   : > { %v3527_v28 = vpop.eup %3526  ;;  %v1769_v60 = vmul.f32 0.5, %v3525_v59 }
 0x8de   : > { %v3529_v7 = vpop.eup %3528  ;;  %v1770_v29 = vadd.f32 0.5, %v1768_v49 }
 0x8df   : > { %v3531_v8 = vpop.eup %3530  ;;  %v1771_v30 = vadd.f32 0.5, %v1769_v60 }
 0x8e0   : > { %v3533_v9 = vpop.eup %3532  ;;  %v1780_v10 = vmul.f32 %v3527_v28, %v1770_v29  ;;  %v1774_v11 = vmul.f32 0.5, %v3531_v8 }
 0x8e1   : > { %v1781_v14 = vmul.f32 %v3529_v7, %v1771_v30  ;;  %v1775_v44 = vmul.f32 0.5, %v3533_v9 }
 0x8e2   : > { %v1776_v51 = vadd.f32 0.5, %v1774_v11 }
 0x8e3   : > { %v1777_v46 = vadd.f32 0.5, %v1775_v44 }
 0x8e4   : > { %v1778_v15 = vmul.f32 %v1776_v51, %v4288_v23 }
 0x8e5   : > { %v1779_v55 = vmul.f32 %v1777_v46, %v4291_v43 }
 0x8e6   : > { %v1782_v38 = vadd.f32 %v1780_v10, %v1778_v15  ;;  %v4401_v10 = vld [vmem:[%s4679_s1 + $0x48] sm:$0xff] }
 0x8e7   : > { %v1783_v41 = vadd.f32 %v1781_v14, %v1779_v55 }
 0x8e8   : > { %v3218_v18 = vpack.c.bf16 %v3781_v34, %v1782_v38  ;;  %v3213_v19 = vpack.c.bf16 %v1782_v38, %v4353_v48 }
 0x8e9   : > { %v3211_v16 = vpack.c.bf16 %v1783_v41, %v4355_v53  ;;  %v3215_v17 = vpack.c.bf16 %v3781_v34, %v1783_v41 }
 0x8eb   : > { %3212 = vmatprep.subr.bf16.mxu0 %v3211_v16  ;;  %3217 = vmatprep.subr.msk.bf16.mxu1 %vm4008_vm5, %v3215_v17 }
 0x8ec   : > { %3214 = vmatpush1.bf16.msra.mxu0 %v3213_v19  ;;  %3220 = vmatpush1.bf16.msk.msra.mxu1 %vm4008_vm5, %v3218_v18 }
 0x8ef   : > { %3085 = vmatmul.mubr.msk.f32.vlgmr.msra.gmra.mrb[50].mxu0 %vm452_vm6, %v4016_v6  ;;  %3089 = vmatmul.mubr.msk.f32.vlgmr.msra.gmra.mrb[34].mxu1 %vm548_vm7, %v4037_v37  ;;  %v3535_v6 = vpop.eup %3534 }
 0x8f0   : > { %1854 = vmatprep.mubr.f32.mxu0 %v3779_v13  ;;  %2008 = vmatprep.mubr.f32.mxu1 %v3779_v13  ;;  %v3537_v23 = vpop.eup %3536  ;;  %v1529_v37 = vmul.f32 0.5, %v3535_v6 }
 0x8f1   : > { %v1530_v43 = vmul.f32 0.5, %v3537_v23  ;;  %v3539_v20 = vpop.eup %3538 }
 0x8f2   : > { %v1531_v21 = vadd.f32 0.5, %v1529_v37  ;;  %v3541_v45 = vpop.eup %3540 }
 0x8f3   : > { %3086 = vmatmul.mubr.msk.f32.gmra.mrb[52].mxu0 %vm452_vm6, %v4029_v36  ;;  %v1532_v39 = vadd.f32 0.5, %v1530_v43 }
 0x8f4   : > { %2244 = vmatprep.mubr.f32.mxu0 %v3779_v13  ;;  %v1535_v36 = vmul.f32 %v3539_v20, %v1531_v21 }
 0x8f5   : > { %v1536_v22 = vmul.f32 %v3541_v45, %v1532_v39 }
 0x9c2   : > { %v1850_v31 = vpop.f32.mrb[50].mxu0  ;;  %v4380_v32 = vpop.f32.mrb[34].mxu1 }
 0x9c3   : > { %3542 = vtanh.f32 %v1850_v31  ;;  %v1852_v63 = vpop.f32.mrb[51].mxu0  ;;  %v4382_v4 = vpop.f32.mrb[35].mxu1  ;;  %v3228_v9 = vpack.c.bf16 %v3781_v34, %v4380_v32 }
 0x9c4   : > { %3544 = vtanh.f32 %v1852_v63  ;;  %v3225_v8 = vpack.c.bf16 %v3781_v34, %v4382_v4 }
 0x9c6   : > { %v1856_v1 = vpop.f32.mrb[52].mxu0 }
 0x9c7   : > { %3546 = vtanh.f32 %v1856_v1  ;;  %v1858_v5 = vpop.f32.mrb[53].mxu0 }
 0x9c8   : > { %3548 = vtanh.f32 %v1858_v5 }
 0x9cd   : > { %v3543_v35 = vpop.eup %3542 }
 0x9ce   : > { %v3545_v12 = vpop.eup %3544  ;;  %v1865_v40 = vmul.f32 0.5, %v3543_v35 }
 0x9cf   : > { %v1866_v47 = vmul.f32 0.5, %v3545_v12 }
 0x9d0   : > { %v1867_v58 = vadd.f32 0.5, %v1865_v40 }
 0x9d1   : > { %v3547_v59 = vpop.eup %3546  ;;  %v1868_v49 = vadd.f32 0.5, %v1866_v47 }
 0x9d2   : > { %v3549_v28 = vpop.eup %3548  ;;  %v4384_v60 = vmul.f32 %v3547_v59, %v1867_v58 }
 0x9d3   : > { %v4386_v7 = vmul.f32 %v3549_v28, %v1868_v49 }
 0x9d4   : > { %v3223_v29 = vpack.c.bf16 %v1535_v36, %v4384_v60 }
 0x9d5   : > { %v3221_v30 = vpack.c.bf16 %v1536_v22, %v4386_v7 }
 0x9d7   : > { %3222 = vmatprep.subr.bf16.mxu1 %v3221_v30 }
 0x9d8   : > { %3224 = vmatpush1.bf16.msra.mxu1 %v3223_v29 }
 0x9d9   : > { %3227 = vmatprep.subr.msk.bf16.mxu1 %vm4008_vm5, %v3225_v8 }
 0x9dc   : > { %3230 = vmatpush1.bf16.msk.msra.mxu1 %vm4008_vm5, %v3228_v9 }
 0x9df   : > { %3092 = vmatmul.mubr.msk.f32.vlgmr.msra.gmra.mrb[36].mxu1 %vm627_vm8, %v4401_v10 }
 0x9e0   : > { %2014 = vmatprep.mubr.f32.mxu1 %v3779_v13 }
 0x9e3   : > { %3093 = vmatmul.mubr.msk.f32.gmra.mrb[38].mxu1 %vm627_vm8, %v4073_v61 }
 0x9e4   : > { %2020 = vmatprep.mubr.f32.mxu1 %v3779_v13 }
 0x9e7   : > { %3094 = vmatmul.mubr.msk.f32.gmra.mrb[40].mxu1 %vm627_vm8, %v4081_v62 }
 0x9e8   : > { %2026 = vmatprep.mubr.f32.mxu1 %v3779_v13 }
 0x9eb   : > { %3095 = vmatmul.mubr.msk.f32.gmra.mrb[42].mxu1 %vm627_vm8, %v4089_v0 }
 0x9ec   : > { %2032 = vmatprep.mubr.f32.mxu1 %v3779_v13 }
 0x9ef   : > { %3096 = vmatmul.mubr.msk.f32.gmra.mrb[44].mxu1 %vm627_vm8, %v4097_v2 }
 0x9f0   : > { %2038 = vmatprep.mubr.f32.mxu1 %v3779_v13 }
 0x9f3   : > { %3097 = vmatmul.mubr.msk.f32.gmra.mrb[46].mxu1 %vm627_vm8, %v4105_v3 }
 0x9f4   : > { %2044 = vmatprep.mubr.f32.mxu1 %v3779_v13 }
 0x9f7   : > { %3098 = vmatmul.mubr.msk.f32.gmra.mrb[48].mxu1 %vm627_vm8, %v4175_v24 }
 0x9f8   : > { %2155 = vmatprep.mubr.f32.mxu1 %v3779_v13 }
 0xab2   : > { %v2010_v61 = vpop.f32.mrb[36].mxu1 }
 0xab3   : > { %v2012_v62 = vpop.f32.mrb[37].mxu1 }
 0xab6   : > { %v2016_v0 = vpop.f32.mrb[38].mxu1 }
 0xab7   : > { %3550 = vtanh.f32 %v2016_v0  ;;  %v2018_v11 = vpop.f32.mrb[39].mxu1 }
 0xab8   : > { %3552 = vtanh.f32 %v2018_v11 }
 0xab9   : > { %3554 = vtanh.f32 %v2010_v61 }
 0xaba   : > { %3556 = vtanh.f32 %v2012_v62  ;;  %v2022_v2 = vpop.f32.mrb[40].mxu1 }
 0xabb   : > { %3558 = vtanh.f32 %v2022_v2  ;;  %v2024_v14 = vpop.f32.mrb[41].mxu1 }
 0xabc   : > { %3560 = vtanh.f32 %v2024_v14 }
 0xabe   : > { %v2028_v3 = vpop.f32.mrb[42].mxu1 }
 0xabf   : > { %v2030_v44 = vpop.f32.mrb[43].mxu1 }
 0xac1   : > { %v3551_v51 = vpop.eup %3550 }
 0xac2   : > { %v3553_v46 = vpop.eup %3552  ;;  %v2055_v15 = vmul.f32 0.5, %v3551_v51  ;;  %v2034_v24 = vpop.f32.mrb[44].mxu1 }
 0xac3   : > { %v3555_v55 = vpop.eup %3554  ;;  %v2056_v38 = vmul.f32 0.5, %v3553_v46  ;;  %3562 = vtanh.f32 %v2034_v24  ;;  %v2036_v41 = vpop.f32.mrb[45].mxu1  ;;  %v2259_v46 = vrot.slane %v4386_v7, 4 }
 0xac4   : > { %v3557_v16 = vpop.eup %3556  ;;  %v2057_v17 = vadd.f32 0.5, %v2055_v15  ;;  %3564 = vtanh.f32 %v2036_v41 }
 0xac5   : > { %v3559_v18 = vpop.eup %3558  ;;  %v2058_v19 = vadd.f32 0.5, %v2056_v38  ;;  %3566 = vtanh.f32 %v2028_v3 }
 0xac6   : > { %v3561_v6 = vpop.eup %3560  ;;  %v2067_v23 = vmul.f32 %v3555_v55, %v2057_v17  ;;  %v2061_v37 = vmul.f32 0.5, %v3559_v18  ;;  %3568 = vtanh.f32 %v2030_v44  ;;  %v2040_v43 = vpop.f32.mrb[46].mxu1 }
 0xac7   : > { %v2068_v20 = vmul.f32 %v3557_v16, %v2058_v19  ;;  %v2062_v21 = vmul.f32 0.5, %v3561_v6  ;;  %3570 = vtanh.f32 %v2040_v43  ;;  %v2042_v39 = vpop.f32.mrb[47].mxu1 }
 0xac8   : > { %v2063_v45 = vadd.f32 0.5, %v2061_v37  ;;  %3572 = vtanh.f32 %v2042_v39 }
 0xac9   : > { %v2064_v22 = vadd.f32 0.5, %v2062_v21 }
 0xaca   : > { %v2065_v36 = vmul.f32 %v2063_v45, %v4262_v27 }
 0xacb   : > { %v2066_v31 = vmul.f32 %v2064_v22, %v4264_v56 }
 0xacc   : > { %v4426_v63 = vadd.f32 %v2067_v23, %v2065_v36 }
 0xacd   : > { %v3563_v1 = vpop.eup %3562  ;;  %v4428_v5 = vadd.f32 %v2068_v20, %v2066_v31 }
 0xace   : > { %v3565_v35 = vpop.eup %3564  ;;  %v2075_v12 = vmul.f32 0.5, %v3563_v1 }
 0xacf   : > { %v3567_v40 = vpop.eup %3566  ;;  %v2076_v47 = vmul.f32 0.5, %v3565_v35 }
 0xad0   : > { %v3569_v58 = vpop.eup %3568  ;;  %v2077_v59 = vadd.f32 0.5, %v2075_v12 }
 0xad1   : > { %v3571_v49 = vpop.eup %3570  ;;  %v2078_v28 = vadd.f32 0.5, %v2076_v47 }
 0xad2   : > { %v3573_v29 = vpop.eup %3572  ;;  %v2087_v8 = vmul.f32 %v3567_v40, %v2077_v59  ;;  %v2081_v30 = vmul.f32 0.5, %v3571_v49 }
 0xad3   : > { %v2088_v9 = vmul.f32 %v3569_v58, %v2078_v28  ;;  %v2082_v27 = vmul.f32 0.5, %v3573_v29 }
 0xad4   : > { %v2083_v61 = vadd.f32 0.5, %v2081_v30 }
 0xad5   : > { %v2084_v56 = vadd.f32 0.5, %v2082_v27 }
 0xad6   : > { %v2085_v62 = vmul.f32 %v2083_v61, %v4380_v32  ;;  %v3104_v32 = vld [vmem:[%s3906_s7 + $0x18] sm:$0xff] }
 0xad7   : > { %v2086_v0 = vmul.f32 %v2084_v56, %v4382_v4  ;;  %v2258_v4 = vrot.slane %v4384_v60, 4 }
 0xad8   : > { %v2089_v11 = vadd.f32 %v2087_v8, %v2085_v62 }
 0xad9   : > { %v2090_v2 = vadd.f32 %v2088_v9, %v2086_v0  ;;  %v2268_v38 = vsel %vm269_vm0, %v3104_v32, %v2258_v4 }
 0xada   : > { %v3238_v44 = vpack.c.bf16 %v3781_v34, %v2089_v11  ;;  %v3233_v51 = vpack.c.bf16 %v2089_v11, %v4426_v63 }
 0xadb   : > { %v3231_v14 = vpack.c.bf16 %v2090_v2, %v4428_v5  ;;  %v3235_v3 = vpack.c.bf16 %v3781_v34, %v2090_v2 }
 0xadd   : > { %3232 = vmatprep.subr.bf16.mxu1 %v3231_v14  ;;  %3237 = vmatprep.subr.msk.bf16.mxu0 %vm4008_vm5, %v3235_v3 }
 0xade   : > { %3234 = vmatpush1.bf16.msra.mxu1 %v3233_v51  ;;  %3240 = vmatpush1.bf16.msk.msra.mxu0 %vm4008_vm5, %v3238_v44 }
 0xae1   : > { %3103 = vmatmul.mubr.msk.f32.vlgmr.msra.gmra.mrb[54].mxu0 %vm548_vm7, %v4129_v42  ;;  %3099 = vmatmul.mubr.msk.f32.vlgmr.msra.gmra.mrb[48].mxu1 %vm452_vm6, %v4183_v25  ;;  %v2254_v42 = vcombine.high %v3104_v32, %v3104_v32 }
 0xae2   : > { %2344 = vmatprep.mubr.f32.mxu0 %v3779_v13  ;;  %2161 = vmatprep.mubr.f32.mxu1 %v3779_v13 }
 0xae3   : > { %v2269_v16 = vsel %vm269_vm0, %v2254_v42, %v2259_v46 }
 0xae5   : > { %3100 = vmatmul.mubr.msk.f32.gmra.mrb[50].mxu1 %vm452_vm6, %v4191_v26 }
 0xae6   : > { %2580 = vmatprep.mubr.f32.mxu1 %v3779_v13 }
 0xbb4   : > { %v4452_v15 = vpop.f32.mrb[54].mxu0 }
 0xbb5   : > { %v2264_v24 = vrot.slane %v4452_v15, 4  ;;  %v4455_v25 = vpop.f32.mrb[55].mxu0 }
 0xbb6   : > { %v2265_v55 = vrot.slane %v4455_v25, 4 }
 0xbb7   : > { %v2270_v26 = vsel %vm269_vm0, %v2258_v4, %v2264_v24  ;;  %v2272_v18 = vsel %vm269_vm0, %v2264_v24, 1.0 }
 0xbb8   : > { %v3243_v41 = vpack.c.bf16 %v2270_v26, %v2268_v38  ;;  %v2271_v60 = vsel %vm269_vm0, %v2259_v46, %v2265_v55  ;;  %v2273_v7 = vsel %vm269_vm0, %v2265_v55, 1.0 }
 0xbb9   : > { %v3241_v17 = vpack.c.bf16 %v2271_v60, %v2269_v16 }
 0xbbb   : > { %3242 = vmatprep.subr.bf16.mxu0 %v3241_v17 }
 0xbbc   : > { %3244 = vmatpush1.bf16.msra.mxu0 %v3243_v41 }
 0xbbd   : > { %3105 = vmatprep.subr.msk.mxu0 %vm298_vm1, %v2273_v7 }
 0xbc0   : > { %3106 = vmatpush1.msk.msra.mxu0 %vm298_vm1, %v2272_v18 }
 0xbc1   : > { %3107 = vmatmul.mubr.msk.f32.vlgmr.msra.gmra.mrb[56].mxu0 %vm276_vm2, %v4305_v54  ;;  %v3651_v54 = vld [vmem:[%s4679_s1 + $0x20] sm:$0xff] }
 0xbc2   : > { %2350 = vmatprep.mubr.f32.mxu0 %v3779_v13 }
 0xbc5   : > { %3108 = vmatmul.mubr.msk.f32.gmra.mrb[58].mxu0 %vm276_vm2, %v4313_v50  ;;  %v3652_v50 = vld [vmem:[%s4679_s1 + $0x28] sm:$0xff] }
 0xbc6   : > { %2356 = vmatprep.mubr.f32.mxu0 %v3779_v13 }
 0xbc9   : > { %3109 = vmatmul.mubr.msk.f32.gmra.mrb[60].mxu0 %vm276_vm2, %v4321_v52  ;;  %v3653_v52 = vld [vmem:[%s4679_s1 + $0x30] sm:$0xff] }
 0xbca   : > { %2362 = vmatprep.mubr.f32.mxu0 %v3779_v13 }
 0xbcd   : > { %3110 = vmatmul.mubr.msk.f32.gmra.mrb[62].mxu0 %vm276_vm2, %v4329_v57  ;;  %v4493_v57 = vpop.f32.mrb[48].mxu1 }
 0xbce   : > { %2368 = vmatprep.mubr.f32.mxu0 %v3779_v13  ;;  %v4495_v19 = vpop.f32.mrb[49].mxu1 }
 0xbcf   : > { %v4497_v6 = vpop.f32.mrb[50].mxu1 }
 0xbd0   : > { %v4499_v23 = vpop.f32.mrb[51].mxu1 }
 0xbd1   : > { %3111 = vmatmul.mubr.msk.f32.gmra.mrb[64].mxu0 %vm276_vm2, %v3651_v54 }
 0xbd2   : > { %2374 = vmatprep.mubr.f32.mxu0 %v3779_v13 }
 0xbd5   : > { %3112 = vmatmul.mubr.msk.f32.gmra.mrb[66].mxu0 %vm276_vm2, %v3652_v50 }
 0xbd6   : > { %2380 = vmatprep.mubr.f32.mxu0 %v3779_v13 }
 0xbd9   : > { %3113 = vmatmul.mubr.msk.f32.gmra.mrb[68].mxu0 %vm276_vm2, %v3653_v52 }
 0xbda   : > { %2491 = vmatprep.mubr.f32.mxu0 %v3779_v13 }
 0xc94   : > { %v2346_v37 = vpop.f32.mrb[56].mxu0 }
 0xc95   : > { %v2348_v43 = vpop.f32.mrb[57].mxu0 }
 0xc98   : > { %v2352_v20 = vpop.f32.mrb[58].mxu0 }
 0xc99   : > { %3574 = vtanh.f32 %v2352_v20  ;;  %v2354_v21 = vpop.f32.mrb[59].mxu0 }
 0xc9a   : > { %3576 = vtanh.f32 %v2354_v21 }
 0xc9b   : > { %3578 = vtanh.f32 %v2346_v37 }
 0xc9c   : > { %3580 = vtanh.f32 %v2348_v43  ;;  %v2358_v39 = vpop.f32.mrb[60].mxu0 }
 0xc9d   : > { %3582 = vtanh.f32 %v2358_v39  ;;  %v2360_v45 = vpop.f32.mrb[61].mxu0  ;;  %v3656_v39 = vld [vmem:[%s4679_s1 + $0x40] sm:$0xff] }
 0xc9e   : > { %3584 = vtanh.f32 %v2360_v45 }
 0xca0   : > { %v2364_v22 = vpop.f32.mrb[62].mxu0 }
 0xca1   : > { %v2366_v36 = vpop.f32.mrb[63].mxu0 }
 0xca3   : > { %v3575_v31 = vpop.eup %3574 }
 0xca4   : > { %v3577_v1 = vpop.eup %3576  ;;  %v2391_v35 = vmul.f32 0.5, %v3575_v31  ;;  %v2370_v12 = vpop.f32.mrb[64].mxu0 }
 0xca5   : > { %v3579_v40 = vpop.eup %3578  ;;  %v2392_v47 = vmul.f32 0.5, %v3577_v1  ;;  %3586 = vtanh.f32 %v2370_v12  ;;  %v2372_v58 = vpop.f32.mrb[65].mxu0 }
 0xca6   : > { %v3581_v59 = vpop.eup %3580  ;;  %v2393_v49 = vadd.f32 0.5, %v2391_v35  ;;  %3588 = vtanh.f32 %v2372_v58 }
 0xca7   : > { %v3583_v28 = vpop.eup %3582  ;;  %v2394_v29 = vadd.f32 0.5, %v2392_v47  ;;  %3590 = vtanh.f32 %v2364_v22 }
 0xca8   : > { %v3585_v8 = vpop.eup %3584  ;;  %v2403_v30 = vmul.f32 %v3579_v40, %v2393_v49  ;;  %v2397_v9 = vmul.f32 0.5, %v3583_v28  ;;  %3592 = vtanh.f32 %v2366_v36  ;;  %v2376_v27 = vpop.f32.mrb[66].mxu0 }
 0xca9   : > { %v2404_v61 = vmul.f32 %v3581_v59, %v2394_v29  ;;  %v2398_v56 = vmul.f32 0.5, %v3585_v8  ;;  %3594 = vtanh.f32 %v2376_v27  ;;  %v2378_v62 = vpop.f32.mrb[67].mxu0 }
 0xcaa   : > { %v2399_v0 = vadd.f32 0.5, %v2397_v9  ;;  %3596 = vtanh.f32 %v2378_v62 }
 0xcab   : > { %v2400_v11 = vadd.f32 0.5, %v2398_v56  ;;  %3598 = vtanh.f32 %v4493_v57 }
 0xcac   : > { %v2401_v2 = vmul.f32 %v2399_v0, %v4353_v48  ;;  %3600 = vtanh.f32 %v4495_v19 }
 0xcad   : > { %v2402_v14 = vmul.f32 %v2400_v11, %v4355_v53  ;;  %3602 = vtanh.f32 %v4497_v6 }
 0xcae   : > { %v2405_v3 = vadd.f32 %v2403_v30, %v2401_v2  ;;  %3604 = vtanh.f32 %v4499_v23 }
 0xcaf   : > { %v3587_v44 = vpop.eup %3586  ;;  %v2406_v51 = vadd.f32 %v2404_v61, %v2402_v14 }
 0xcb0   : > { %v3589_v32 = vpop.eup %3588  ;;  %2904 = vst [vmem:[%s3908_s8 + $0x20] sm:$0xff] %v2405_v3  ;;  %v2411_v4 = vmul.f32 0.5, %v3587_v44  ;;  %v3657_v44 = vld [vmem:[%s4679_s1 + $0x50] sm:$0xff] }
 0xcb1   : > { %v3591_v46 = vpop.eup %3590  ;;  %v2412_v42 = vmul.f32 0.5, %v3589_v32  ;;  %2905 = vst [vmem:[%s3908_s8 + $0x28] sm:$0xff] %v2406_v51  ;;  %v3660_v32 = vld [vmem:[%s4679_s1 + $0x68] sm:$0xff] }
 0xcb2   : > { %v3593_v24 = vpop.eup %3592  ;;  %v2413_v55 = vadd.f32 0.5, %v2411_v4  ;;  %v3661_v4 = vld [vmem:[%s4679_s1 + $0x70] sm:$0xff] }
 0xcb3   : > { %v3595_v38 = vpop.eup %3594  ;;  %v2414_v26 = vadd.f32 0.5, %v2412_v42 }
 0xcb4   : > { %v3597_v41 = vpop.eup %3596  ;;  %v2423_v16 = vmul.f32 %v3591_v46, %v2413_v55  ;;  %v2417_v60 = vmul.f32 0.5, %v3595_v38  ;;  %v3662_v46 = vld [vmem:[%s4679_s1 + $0x78] sm:$0xff] }
 0xcb5   : > { %v2424_v17 = vmul.f32 %v3593_v24, %v2414_v26  ;;  %v2418_v48 = vmul.f32 0.5, %v3597_v41  ;;  %v3599_v45 = vpop.eup %3598 }
 0xcb6   : > { %v2419_v7 = vadd.f32 0.5, %v2417_v60  ;;  %v3601_v22 = vpop.eup %3600  ;;  %v2172_v36 = vmul.f32 0.5, %v3599_v45 }
 0xcb7   : > { %v2420_v53 = vadd.f32 0.5, %v2418_v48  ;;  %v2173_v31 = vmul.f32 0.5, %v3601_v22  ;;  %v3603_v1 = vpop.eup %3602 }
 0xcb8   : > { %v2421_v18 = vmul.f32 %v2419_v7, %v4452_v15  ;;  %v3654_v15 = vld [vmem:[%s4679_s1 + $0x38] sm:$0xff]  ;;  %v2174_v35 = vadd.f32 0.5, %v2172_v36  ;;  %v3605_v40 = vpop.eup %3604 }
 0xcb9   : > { %v2422_v54 = vmul.f32 %v2420_v53, %v4455_v25  ;;  %v3655_v25 = vld [vmem:[%s4679_s1 + $0x90] sm:$0xff]  ;;  %v2175_v12 = vadd.f32 0.5, %v2173_v31 }
 0xcba   : > { %v2425_v50 = vadd.f32 %v2423_v16, %v2421_v18  ;;  %v2178_v58 = vmul.f32 %v3603_v1, %v2174_v35 }
 0xcbb   : > { %v2426_v52 = vadd.f32 %v2424_v17, %v2422_v54  ;;  %v2179_v47 = vmul.f32 %v3605_v40, %v2175_v12 }
 0xcbc   : > { %v3247_v37 = vpack.c.bf16 %v2425_v50, %v2405_v3  ;;  %v3252_v21 = vpack.c.bf16 %v3781_v34, %v2425_v50 }
 0xcbd   : > { %v3245_v43 = vpack.c.bf16 %v2426_v52, %v2406_v51  ;;  %v3249_v20 = vpack.c.bf16 %v3781_v34, %v2426_v52  ;;  %v3658_v51 = vld [vmem:[%s4679_s1 + $0x58] sm:$0xff] }
 0xcbf   : > { %3246 = vmatprep.subr.bf16.mxu0 %v3245_v43  ;;  %3251 = vmatprep.subr.msk.bf16.mxu1 %vm4008_vm5, %v3249_v20 }
 0xcc0   : > { %3248 = vmatpush1.bf16.msra.mxu0 %v3247_v37  ;;  %3254 = vmatpush1.bf16.msk.msra.mxu1 %vm4008_vm5, %v3252_v21 }
 0xcc3   : > { %3114 = vmatmul.mubr.msk.f32.vlgmr.msra.gmra.mrb[68].mxu0 %vm452_vm6, %v3654_v15  ;;  %3118 = vmatmul.mubr.msk.f32.vlgmr.msra.gmra.mrb[52].mxu1 %vm548_vm7, %v3655_v25 }
 0xcc4   : > { %2497 = vmatprep.mubr.f32.mxu0 %v3779_v13  ;;  %2651 = vmatprep.mubr.f32.mxu1 %v3779_v13 }
 0xcc7   : > { %3115 = vmatmul.mubr.msk.f32.gmra.mrb[70].mxu0 %vm452_vm6, %v3656_v39 }
 0xcc8   : > { %2887 = vmatprep.mubr.f32.mxu0 %v3779_v13 }
 0xd96   : > { %v2493_v59 = vpop.f32.mrb[68].mxu0  ;;  %v4532_v49 = vpop.f32.mrb[52].mxu1 }
 0xd97   : > { %3606 = vtanh.f32 %v2493_v59  ;;  %v2495_v57 = vpop.f32.mrb[69].mxu0  ;;  %v4534_v19 = vpop.f32.mrb[53].mxu1  ;;  %v3262_v3 = vpack.c.bf16 %v3781_v34, %v4532_v49 }
 0xd98   : > { %3608 = vtanh.f32 %v2495_v57  ;;  %v3259_v2 = vpack.c.bf16 %v3781_v34, %v4534_v19 }
 0xd9a   : > { %v2499_v6 = vpop.f32.mrb[70].mxu0 }
 0xd9b   : > { %3610 = vtanh.f32 %v2499_v6  ;;  %v2501_v23 = vpop.f32.mrb[71].mxu0 }
 0xd9c   : > { %3612 = vtanh.f32 %v2501_v23 }
 0xda1   : > { %v3607_v28 = vpop.eup %3606 }
 0xda2   : > { %v3609_v29 = vpop.eup %3608  ;;  %v2508_v8 = vmul.f32 0.5, %v3607_v28 }
 0xda3   : > { %v2509_v30 = vmul.f32 0.5, %v3609_v29 }
 0xda4   : > { %v2510_v9 = vadd.f32 0.5, %v2508_v8 }
 0xda5   : > { %v3611_v27 = vpop.eup %3610  ;;  %v2511_v61 = vadd.f32 0.5, %v2509_v30 }
 0xda6   : > { %v3613_v56 = vpop.eup %3612  ;;  %v2514_v62 = vmul.f32 %v3611_v27, %v2510_v9 }
 0xda7   : > { %v2515_v0 = vmul.f32 %v3613_v56, %v2511_v61 }
 0xda8   : > { %v3257_v11 = vpack.c.bf16 %v2178_v58, %v2514_v62  ;;  %2900 = vst [vmem:[%s3908_s8] sm:$0xff] %v2514_v62 }
 0xda9   : > { %v3255_v14 = vpack.c.bf16 %v2179_v47, %v2515_v0  ;;  %2901 = vst [vmem:[%s3908_s8 + $0x8] sm:$0xff] %v2515_v0 }
 0xdab   : > { %3256 = vmatprep.subr.bf16.mxu1 %v3255_v14 }
 0xdac   : > { %3258 = vmatpush1.bf16.msra.mxu1 %v3257_v11 }
 0xdad   : > { %3261 = vmatprep.subr.msk.bf16.mxu1 %vm4008_vm5, %v3259_v2 }
 0xdb0   : > { %3264 = vmatpush1.bf16.msk.msra.mxu1 %vm4008_vm5, %v3262_v3 }
 0xdb3   : > { %3121 = vmatmul.mubr.msk.f32.vlgmr.msra.gmra.mrb[54].mxu1 %vm627_vm8, %v4401_v10  ;;  %v3659_v10 = vld [vmem:[%s4679_s1 + $0x60] sm:$0xff] }
 0xdb4   : > { %2657 = vmatprep.mubr.f32.mxu1 %v3779_v13 }
 0xdb7   : > { %3122 = vmatmul.mubr.msk.f32.gmra.mrb[56].mxu1 %vm627_vm8, %v3657_v44 }
 0xdb8   : > { %2663 = vmatprep.mubr.f32.mxu1 %v3779_v13 }
 0xdbb   : > { %3123 = vmatmul.mubr.msk.f32.gmra.mrb[58].mxu1 %vm627_vm8, %v3658_v51 }
 0xdbc   : > { %2669 = vmatprep.mubr.f32.mxu1 %v3779_v13 }
 0xdbf   : > { %3124 = vmatmul.mubr.msk.f32.gmra.mrb[60].mxu1 %vm627_vm8, %v3659_v10 }
 0xdc0   : > { %2675 = vmatprep.mubr.f32.mxu1 %v3779_v13 }
 0xdc3   : > { %3125 = vmatmul.mubr.msk.f32.gmra.mrb[62].mxu1 %vm627_vm8, %v3660_v32 }
 0xdc4   : > { %2681 = vmatprep.mubr.f32.mxu1 %v3779_v13 }
 0xdc7   : > { %3126 = vmatmul.mubr.msk.f32.gmra.mrb[64].mxu1 %vm627_vm8, %v3661_v4 }
 0xdc8   : > { %2687 = vmatprep.mubr.f32.mxu1 %v3779_v13 }
 0xdcb   : > { %3127 = vmatmul.mubr.msk.f32.gmra.mrb[66].mxu1 %vm627_vm8, %v3662_v46 }
 0xdcc   : > { %2798 = vmatprep.mubr.f32.mxu1 %v3779_v13 }
 0xe86   : > { %v2653_v42 = vpop.f32.mrb[54].mxu1 }
 0xe87   : > { %v2655_v24 = vpop.f32.mrb[55].mxu1 }
 0xe8a   : > { %v2659_v55 = vpop.f32.mrb[56].mxu1 }
 0xe8b   : > { %3614 = vtanh.f32 %v2659_v55  ;;  %v2661_v38 = vpop.f32.mrb[57].mxu1 }
 0xe8c   : > { %3616 = vtanh.f32 %v2661_v38 }
 0xe8d   : > { %3618 = vtanh.f32 %v2653_v42 }
 0xe8e   : > { %3620 = vtanh.f32 %v2655_v24  ;;  %v2665_v26 = vpop.f32.mrb[58].mxu1 }
 0xe8f   : > { %3622 = vtanh.f32 %v2665_v26  ;;  %v2667_v41 = vpop.f32.mrb[59].mxu1 }
 0xe90   : > { %3624 = vtanh.f32 %v2667_v41 }
 0xe92   : > { %v2671_v16 = vpop.f32.mrb[60].mxu1 }
 0xe93   : > { %v2673_v60 = vpop.f32.mrb[61].mxu1 }
 0xe95   : > { %v3615_v17 = vpop.eup %3614 }
 0xe96   : > { %v3617_v48 = vpop.eup %3616  ;;  %v2698_v7 = vmul.f32 0.5, %v3615_v17  ;;  %v2677_v53 = vpop.f32.mrb[62].mxu1 }
 0xe97   : > { %v3619_v18 = vpop.eup %3618  ;;  %v2699_v54 = vmul.f32 0.5, %v3617_v48  ;;  %3626 = vtanh.f32 %v2677_v53  ;;  %v2679_v50 = vpop.f32.mrb[63].mxu1 }
 0xe98   : > { %v3621_v52 = vpop.eup %3620  ;;  %v2700_v37 = vadd.f32 0.5, %v2698_v7  ;;  %3628 = vtanh.f32 %v2679_v50 }
 0xe99   : > { %v3623_v43 = vpop.eup %3622  ;;  %v2701_v20 = vadd.f32 0.5, %v2699_v54  ;;  %3630 = vtanh.f32 %v2671_v16 }
 0xe9a   : > { %v3625_v21 = vpop.eup %3624  ;;  %v2710_v15 = vmul.f32 %v3619_v18, %v2700_v37  ;;  %v2704_v25 = vmul.f32 0.5, %v3623_v43  ;;  %3632 = vtanh.f32 %v2673_v60  ;;  %v2683_v39 = vpop.f32.mrb[64].mxu1 }
 0xe9b   : > { %v2711_v45 = vmul.f32 %v3621_v52, %v2701_v20  ;;  %v2705_v22 = vmul.f32 0.5, %v3625_v21  ;;  %3634 = vtanh.f32 %v2683_v39  ;;  %v2685_v36 = vpop.f32.mrb[65].mxu1 }
 0xe9c   : > { %v2706_v31 = vadd.f32 0.5, %v2704_v25  ;;  %3636 = vtanh.f32 %v2685_v36 }
 0xe9d   : > { %v2707_v1 = vadd.f32 0.5, %v2705_v22 }
 0xe9e   : > { %v2708_v35 = vmul.f32 %v2706_v31, %v4426_v63 }
 0xe9f   : > { %v2709_v12 = vmul.f32 %v2707_v1, %v4428_v5 }
 0xea0   : > { %v2712_v40 = vadd.f32 %v2710_v15, %v2708_v35 }
 0xea1   : > { %v3627_v47 = vpop.eup %3626  ;;  %v2713_v58 = vadd.f32 %v2711_v45, %v2709_v12 }
 0xea2   : > { %v3629_v59 = vpop.eup %3628  ;;  %2908 = vst [vmem:[%s3908_s8 + $0x40] sm:$0xff] %v2712_v40  ;;  %v2718_v57 = vmul.f32 0.5, %v3627_v47 }
 0xea3   : > { %v3631_v6 = vpop.eup %3630  ;;  %v2719_v23 = vmul.f32 0.5, %v3629_v59  ;;  %2909 = vst [vmem:[%s3908_s8 + $0x48] sm:$0xff] %v2713_v58 }
 0xea4   : > { %v3633_v28 = vpop.eup %3632  ;;  %v2720_v29 = vadd.f32 0.5, %v2718_v57 }
 0xea5   : > { %v3635_v8 = vpop.eup %3634  ;;  %v2721_v30 = vadd.f32 0.5, %v2719_v23 }
 0xea6   : > { %v3637_v9 = vpop.eup %3636  ;;  %v2730_v27 = vmul.f32 %v3631_v6, %v2720_v29  ;;  %v2724_v61 = vmul.f32 0.5, %v3635_v8 }
 0xea7   : > { %v2731_v56 = vmul.f32 %v3633_v28, %v2721_v30  ;;  %v2725_v63 = vmul.f32 0.5, %v3637_v9 }
 0xea8   : > { %v2726_v62 = vadd.f32 0.5, %v2724_v61 }
 0xea9   : > { %v2727_v5 = vadd.f32 0.5, %v2725_v63 }
 0xeaa   : > { %v2728_v0 = vmul.f32 %v2726_v62, %v4532_v49  ;;  %v3663_v49 = vld [vmem:[%s4679_s1 + $0x98] sm:$0xff] }
 0xeab   : > { %v2729_v11 = vmul.f32 %v2727_v5, %v4534_v19  ;;  %v3664_v19 = vld [vmem:[%s4679_s1 + $0x80] sm:$0xff] }
 0xeac   : > { %v2732_v2 = vadd.f32 %v2730_v27, %v2728_v0 }
 0xead   : > { %v2733_v14 = vadd.f32 %v2731_v56, %v2729_v11 }
 0xeae   : > { %v3267_v51 = vpack.c.bf16 %v2732_v2, %v2712_v40  ;;  %v3272_v10 = vpack.c.bf16 %v3781_v34, %v2732_v2 }
 0xeaf   : > { %v3265_v3 = vpack.c.bf16 %v2733_v14, %v2713_v58  ;;  %v3269_v44 = vpack.c.bf16 %v3781_v34, %v2733_v14  ;;  %v2896_v34 = vstv %s2895_s25 }
 0xeb0   : > { %vm2897_vm9 = vcmp.eq.s32.totalorder %v2896_v34, 1 }
 0xeb1   : > { %3266 = vmatprep.subr.bf16.mxu1 %v3265_v3  ;;  %3271 = vmatprep.subr.msk.bf16.mxu0 %vm4008_vm5, %v3269_v44 }
 0xeb2   : > { %3268 = vmatpush1.bf16.msra.mxu1 %v3267_v51  ;;  %3274 = vmatpush1.bf16.msk.msra.mxu0 %vm4008_vm5, %v3272_v10 }
 0xeb5   : > { %3132 = vmatmul.mubr.msk.f32.vlgmr.msra.gmra.mrb[72].mxu0 %vm548_vm7, %v3663_v49  ;;  %3128 = vmatmul.mubr.msk.f32.vlgmr.msra.gmra.mrb[66].mxu1 %vm452_vm6, %v3664_v19 }
 0xeb6   : > { %2804 = vmatprep.mubr.f32.mxu1 %v3779_v13 }
 0xeb9   : > { %3129 = vmatmul.mubr.msk.f32.gmra.mrb[68].mxu1 %vm452_vm6, %v3665_v33 }
 0xf88   : > { %v2889_v32 = vpop.f32.mrb[72].mxu0  ;;  %v2800_v4 = vpop.f32.mrb[66].mxu1 }
 0xf89   : > { %v2898_v46 = vsel %vm2897_vm9, %v2732_v2, %v2889_v32  ;;  %v2891_v42 = vpop.f32.mrb[73].mxu0  ;;  %3638 = vtanh.f32 %v2800_v4  ;;  %v2802_v24 = vpop.f32.mrb[67].mxu1 }
 0xf8a   : > { %2902 = vst [vmem:[%s3908_s8 + $0x10] sm:$0xff] %v2898_v46  ;;  %v2899_v13 = vsel %vm2897_vm9, %v2733_v14, %v2891_v42  ;;  %3640 = vtanh.f32 %v2802_v24 }
 0xf8b   : > { %2903 = vst [vmem:[%s3908_s8 + $0x18] sm:$0xff] %v2899_v13 }
 0xf8c   : > { %v2806_v55 = vpop.f32.mrb[68].mxu1 }
 0xf8d   : > { %3642 = vtanh.f32 %v2806_v55  ;;  %v2808_v38 = vpop.f32.mrb[69].mxu1 }
 0xf8e   : > { %3644 = vtanh.f32 %v2808_v38 }
 0xf93   : > { %v3639_v26 = vpop.eup %3638 }
 0xf94   : > { %v3641_v41 = vpop.eup %3640  ;;  %v2815_v16 = vmul.f32 0.5, %v3639_v26 }
 0xf95   : > { %v2816_v60 = vmul.f32 0.5, %v3641_v41 }
 0xf96   : > { %v2817_v17 = vadd.f32 0.5, %v2815_v16 }
 0xf97   : > { %v3643_v48 = vpop.eup %3642  ;;  %v2818_v7 = vadd.f32 0.5, %v2816_v60 }
 0xf98   : > { %v3645_v53 = vpop.eup %3644  ;;  %v2821_v18 = vmul.f32 %v3643_v48, %v2817_v17 }
 0xf99   : > { %v2822_v54 = vmul.f32 %v3645_v53, %v2818_v7 }
 0xf9a   : > { %2906 = vst [vmem:[%s3908_s8 + $0x30] sm:$0xff] %v2821_v18 }
 0xf9b   : > { %2907 = vst [vmem:[%s3908_s8 + $0x38] sm:$0xff] %v2822_v54 }
 0xf9c   : > { %3679 = shalt.err (!%p3676_p13)
}
 0xf9d   : > { %s3680_s29 = scalar_lea.hbm %s4612_s12, 1280  ;;  %s3684_s28 = scalar_lea.hbm %s4680_s2, 2560 }
 0xf9e   : > { %p3681_p0 = scmp.ne.s32.totalorder %s4612_s12, %s3680_s29  ;;  %p3685_p3 = scmp.lt.u32.totalorder %s4612_s12, %s4680_s2 }
 0xf9f   : > { %p3686_p4 = scmp.lt.u32.totalorder %s3684_s28, %s3680_s29  ;;  %p3688_p6 = scmp.lt.u32.totalorder %s3680_s29, %s4612_s12 }
 0xfa0   : > { %p3682_p1 = pnand %p3681_p0, %p3873_p7 }
 0xfa1   : > { %p3687_p5 = por %p3686_p4, %p3685_p3 }
 0xfa2   : > { %p3683_p2 = pneg %p3682_p1 }
 0xfa3   : > { %p3689_p8 = por %p3688_p6, %p3687_p5 }
 0xfa5   : > { %p3690_p9 = pnand %p3689_p8, %p3683_p2 }
 0xfa7   : > { %3693 = shalt.err (!%p3690_p9)
}
 0xfa8   : > { %s3783_s6 = smov 256   ;;  %s3784_s7 = smov 512  }
 0xfa9   : > { %s3785_s19 = smov 16  }
 0xfaa   : > { %3292 = dma.vmem_to_hbm [thread:$0]  (%p3873_p7), %s4614_s5, 1280, %s4612_s12, %s4620_s15, %s3783_s6, %s3784_s7, %s3785_s19  }
 0xfab PF: > { %p3298_p10 = scmp.ge.s32.totalorder %s3776_s18, 2  ;;  %s2939_s20 = sand.u32 1, %s3740_s9  }
 0xfac   : > { %s2940_s24 = scalar_lea.sflag [#allocation4], %s2939_s20 }
 0xfad   : > { %p3295_p11 = pnand %p3298_p10, %p3881_p12 }
 0xfaf   : > { %3735 = dma.done.wait (!%p3295_p11), %s2940_s24, 1280  }
 0xfb0   : > { %3737 = vsyncadd (!%p3295_p11), %s2940_s24, 4294966016  ;;  %s15_s18 = sadd.s32 1, %s3776_s18   ;;  %s4686_s9 = smov %s3744_s10 }
 0xfb1   : > { %p12_p13 = scmp.ge.s32.totalorder %s15_s18, 6   ;;  %s4687_s10 = smov %s3748_s11 }
 0xfb2   : > { %s4688_s11 = smov %s3886_s3  ;;  %s4689_s12 = smov %s3756_s13 }
 0xfb3   : > { %s4690_s13 = smov %s3889_s4  ;;  %s4691_s14 = smov %s3768_s16 }
 0xfb4   : > { %s4692_s15 = smov %s3772_s17  ;;  %s4693_s16 = smov %s4696_s21 }
 0xfb5   : > { %s4694_s17 = smov %s4700_s22  ;;  %14 = sbr.rel (!%p12_p13) target bundleno = 6 (0x6), region = 113 }
 0xfbc   :  { %2945 = vsyncpa [#allocation4], 1 }
 0xfbd   :  { %2947 = vsyncpa [#allocation4 + $0x1], 1 }

</bundles_post_ra>
